<compile_context>
chip_gen: v5e
topology: v5e:2x2
jax: 0.10.0
libtpu: 0.0.40
codegen_flags: <defaults>
</compile_context>

<pallas_src>
import functools

import jax
import jax.numpy as jnp
from jax.experimental import pallas as pl
from jax.experimental.pallas import tpu as pltpu


def _round_up(x, m):
    return (x + m - 1) // m * m


def _vmem_estimate_bytes(tile, d_pad, h_pad, in_bytes, out_bytes):
    """Rough VMEM footprint of one pipelined grid step (double-buffered)."""
    w = 2 * 2 * d_pad * h_pad * in_bytes          # W and W^T, double-buffered
    x = 2 * tile * d_pad * in_bytes               # token tile
    rec = 2 * tile * d_pad * out_bytes            # reconstruction tile
    hid = 2 * tile * h_pad * out_bytes            # hidden tile
    tmp = tile * (2 * h_pad + d_pad) * 4          # f32 pre/h + recon temporaries
    return w + x + rec + hid + tmp + (1 << 20)


def _sae_kernel(x_ref, w_ref, wt_ref, b_ref,
                recon_ref, hid_ref, sp_ref, rc_ref,
                *, tile, n_valid):
    """One tile of tokens: encoder matmul + ReLU, decoder matmul, loss partials.

    x_ref     : (TILE, Dp)   trimmed residual-stream tokens (compute dtype)
    w_ref     : (Dp, Hp)     row-normalized (tied) encoder matrix
    wt_ref    : (Hp, Dp)     pre-transposed decoder matrix (same weights)
    b_ref     : (1, Hp)      encoder bias (f32)
    recon_ref : (TILE, Dp)   reconstruction output
    hid_ref   : (TILE, Hp)   hidden (feature) activations output
    sp_ref    : (1, 8, 128)  this tile's sum(|hidden|)          (lane-dense)
    rc_ref    : (1, 8, 128)  this tile's sum(||x - recon||_2)   (lane-dense)
    """
    i = pl.program_id(0)

    x = x_ref[...]                                                # (TILE, Dp)

    # Encoder: ReLU(x @ W_norm + b); MXU accumulates in f32.
    pre = jnp.dot(x, w_ref[...],
                  preferred_element_type=jnp.float32) + b_ref[...]
    h = jnp.maximum(pre, 0.0)                                     # (TILE, Hp) f32
    h_c = h.astype(hid_ref.dtype)

    # Decoder: hidden @ W_norm^T (W^T precomputed in the wrapper, so there is
    # no per-step transpose through the XLU).
    recon = jnp.dot(h_c.astype(wt_ref.dtype), wt_ref[...],
                    preferred_element_type=jnp.float32)           # (TILE, Dp) f32

    hid_ref[...] = h_c
    recon_ref[...] = recon.astype(recon_ref.dtype)

    # Per-tile partial loss sums.  Padded token rows are masked; padded D/H
    # columns are exactly zero already (zero-padded inputs/weights/bias), so
    # they contribute nothing.
    row_ids = jax.lax.broadcasted_iota(jnp.int32, (tile, 1), 0) + i * tile
    valid = (row_ids < n_valid).astype(jnp.float32)               # (TILE, 1)

    sp_part = jnp.sum(jnp.abs(h) * valid)                         # scalar f32
    diff = (x.astype(jnp.float32) - recon) * valid
    row_l2 = jnp.sqrt(jnp.sum(diff * diff, axis=-1, keepdims=True))  # (TILE, 1)
    rc_part = jnp.sum(row_l2)                                     # scalar f32

    lane = jnp.ones((1, 8, 128), jnp.float32)                     # lane-dense slab
    sp_ref[...] = sp_part * lane
    rc_ref[...] = rc_part * lane


@functools.partial(jax.jit, static_argnames=(
    "window_start_trim", "window_end_trim", "sparsity_coeff", "tile",
    "compute_dtype", "out_dtype"))
def sparse_autoencoder_forward(resid, enc_dec_matrix, encoder_bias,
                               *, window_start_trim=0, window_end_trim=0,
                               sparsity_coeff=0.1, tile=256,
                               compute_dtype=jnp.bfloat16,
                               out_dtype=jnp.bfloat16):
    """Mirrors SparseAutoencoder.forward (tied weights, no decoder bias,
    normalize_inputs=False).  Returns the same tuple structure as the module."""
    B, T, D = resid.shape
    H = enc_dec_matrix.shape[1]

    # trim_to_window
    trimmed = resid[:, window_start_trim:T - window_end_trim, :]
    Tt = trimmed.shape[1]
    N = B * Tt

    # F.normalize(W, p=2, dim=1): unit L2 norm of each row (length H), eps=1e-12.
    # Normalize in f32, then cast to the MXU compute dtype.
    w_f32 = enc_dec_matrix.astype(jnp.float32)
    row_norm = jnp.sqrt(jnp.sum(w_f32 * w_f32, axis=1, keepdims=True))
    w_norm = w_f32 / jnp.maximum(row_norm, 1e-12)

    # Pad to lane-dense shapes (unmasked vst), tokens to a tile multiple.
    d_pad = _round_up(D, 128)
    h_pad = _round_up(H, 128)

    in_bytes = jnp.dtype(compute_dtype).itemsize
    out_bytes = jnp.dtype(out_dtype).itemsize

    # Clamp the token tile to a conservative VMEM budget (v7x: 64 MiB / TC).
    vmem_budget = 48 * 1024 * 1024
    while tile > 128 and _vmem_estimate_bytes(
            tile, d_pad, h_pad, in_bytes, out_bytes) > vmem_budget:
        tile //= 2
    assert tile % 8 == 0

    n_pad = _round_up(N, tile)
    grid_n = n_pad // tile

    x2d = trimmed.reshape(N, D).astype(jnp.float32)
    x2d = jnp.pad(x2d, ((0, n_pad - N), (0, d_pad - D))).astype(compute_dtype)
    w_p = jnp.pad(w_norm, ((0, d_pad - D), (0, h_pad - H))).astype(compute_dtype)
    wt_p = w_p.T                               # pre-transposed decoder weight
    b_p = jnp.pad(encoder_bias.astype(jnp.float32),
                  (0, h_pad - H)).reshape(1, h_pad)

    kernel = functools.partial(_sae_kernel, tile=tile, n_valid=N)

    recon_p, hid_p, sp_part, rc_part = pl.pallas_call(
        kernel,
        grid=(grid_n,),
        in_specs=[
            pl.BlockSpec((tile, d_pad), lambda i: (i, 0)),    # x tokens
            pl.BlockSpec((d_pad, h_pad), lambda i: (0, 0)),   # W_norm (encoder)
            pl.BlockSpec((h_pad, d_pad), lambda i: (0, 0)),   # W_norm^T (decoder)
            pl.BlockSpec((1, h_pad), lambda i: (0, 0)),       # encoder bias
        ],
        out_specs=[
            pl.BlockSpec((tile, d_pad), lambda i: (i, 0)),    # reconstruction
            pl.BlockSpec((tile, h_pad), lambda i: (i, 0)),    # hidden features
            pl.BlockSpec((1, 8, 128), lambda i: (i, 0, 0)),   # per-tile sum|h|
            pl.BlockSpec((1, 8, 128), lambda i: (i, 0, 0)),   # per-tile sum L2
        ],
        out_shape=[
            jax.ShapeDtypeStruct((n_pad, d_pad), out_dtype),
            jax.ShapeDtypeStruct((n_pad, h_pad), out_dtype),
            jax.ShapeDtypeStruct((grid_n, 8, 128), jnp.float32),
            jax.ShapeDtypeStruct((grid_n, 8, 128), jnp.float32),
        ],
        compiler_params=pltpu.CompilerParams(
            dimension_semantics=("parallel",),
            vmem_limit_bytes=64 * 1024 * 1024),
    )(x2d, w_p, wt_p, b_p)

    reconstruction = recon_p[:N, :D].reshape(B, Tt, D)
    hidden_layer = hid_p[:N, :H].reshape(B, Tt, H)

    # Reduce the per-tile partial sums; divide by the *unpadded* numels
    # (matches torch .numel() in the original module).
    sparsity_loss = jnp.sum(sp_part[:, 0, 0]) / (N * H)
    reconstruction_loss = jnp.sum(rc_part[:, 0, 0]) / (N * D)
    total_loss = reconstruction_loss + sparsity_coeff * sparsity_loss

    return ((reconstruction, hidden_layer, reconstruction_loss,
             sparsity_loss, trimmed), total_loss)


def _reference_forward(resid, W, b, sparsity_coeff=0.1):
    """Pure-JAX f32 reference of the same math, for a correctness check."""
    trimmed = resid.astype(jnp.float32)
    wn = W / jnp.maximum(jnp.linalg.norm(W, axis=1, keepdims=True), 1e-12)
    h = jax.nn.relu(trimmed @ wn + b)
    recon = h @ wn.T
    sp = jnp.sum(jnp.abs(h)) / h.size
    rc = jnp.sum(jnp.linalg.norm(trimmed - recon, axis=-1)) / trimmed.size
    return recon, h, rc, sp, rc + sparsity_coeff * sp


if __name__ == "__main__":
    # Synthetic config consistent with the module:
    #   d_model = 32, feature_ratio = 2 -> hidden = 64, window_length = 8,
    #   batch = 2, tied weights, no decoder bias, no input normalization.
    B, T, D, H = 2, 8, 32, 64

    key = jax.random.PRNGKey(0)
    k_resid, k_w, k_b = jax.random.split(key, 3)

    resid = jax.random.normal(k_resid, (B, T, D), dtype=jnp.float32)
    enc_dec_matrix = jax.random.normal(k_w, (D, H), dtype=jnp.float32)
    encoder_bias = jax.random.normal(k_b, (H,), dtype=jnp.float32)

    (recon, hidden, rc_loss, sp_loss, trimmed), total = \
        sparse_autoencoder_forward(resid, enc_dec_matrix, encoder_bias,
                                   sparsity_coeff=0.1)
    jax.block_until_ready((recon, hidden, rc_loss, sp_loss, trimmed, total))

    # Sanity check against the pure-JAX f32 reference (the kernel runs matmuls
    # with bf16 operands / f32 accumulation, so use bf16-appropriate tolerances).
    r_recon, r_hid, r_rc, r_sp, r_total = _reference_forward(
        resid, enc_dec_matrix, encoder_bias, 0.1)

    assert recon.shape == (B, T, D) and hidden.shape == (B, T, H)
    assert trimmed.shape == (B, T, D)
    assert jnp.allclose(recon.astype(jnp.float32), r_recon, atol=1e-1, rtol=1e-1)
    assert jnp.allclose(hidden.astype(jnp.float32), r_hid, atol=1e-1, rtol=1e-1)
    assert jnp.allclose(rc_loss, r_rc, atol=5e-2, rtol=5e-2)
    assert jnp.allclose(sp_loss, r_sp, atol=5e-2, rtol=5e-2)
    assert jnp.allclose(total, r_total, atol=5e-2, rtol=5e-2)

    print("KERNEL_OK")
</pallas_src>

<mosaic_0001>
module attributes {stable_mosaic.version = 11 : i64} {
  func.func @_sae_kernel(%arg0: i32, %arg1: memref<256x128xbf16, #tpu.memory_space<vmem>>, %arg2: memref<128x128xbf16, #tpu.memory_space<vmem>>, %arg3: memref<128x128xbf16, #tpu.memory_space<vmem>>, %arg4: memref<1x128xf32, #tpu.memory_space<vmem>>, %arg5: memref<256x128xbf16, #tpu.memory_space<vmem>>, %arg6: memref<256x128xbf16, #tpu.memory_space<vmem>>, %arg7: memref<1x8x128xf32, #tpu.memory_space<vmem>>, %arg8: memref<1x8x128xf32, #tpu.memory_space<vmem>>) attributes {dimension_semantics = [#tpu.dimension_semantics<parallel>], iteration_bounds = array<i64: 1>, scalar_prefetch = 0 : i64, scratch_operands = 0 : i64, tpu.core_type = #tpu.core_type<tc>, window_params = [{transform_indices = @transform_0, window_bounds = array<i64: 256, 128>}, {pipeline_mode = #tpu.pipeline_mode<synchronous>, transform_indices = @transform_1, window_bounds = array<i64: 128, 128>}, {pipeline_mode = #tpu.pipeline_mode<synchronous>, transform_indices = @transform_2, window_bounds = array<i64: 128, 128>}, {pipeline_mode = #tpu.pipeline_mode<synchronous>, transform_indices = @transform_3, window_bounds = array<i64: 1, 128>}, {transform_indices = @transform_4, window_bounds = array<i64: 256, 128>}, {transform_indices = @transform_5, window_bounds = array<i64: 256, 128>}, {transform_indices = @transform_6, window_bounds = array<i64: 1, 8, 128>}, {transform_indices = @transform_7, window_bounds = array<i64: 1, 8, 128>}]} {
    %c0 = arith.constant 0 : index
    %c0_0 = arith.constant 0 : index
    %0 = vector.load %arg1[%c0, %c0_0] : memref<256x128xbf16, #tpu.memory_space<vmem>>, vector<256x128xbf16>
    %c0_1 = arith.constant 0 : index
    %c0_2 = arith.constant 0 : index
    %1 = vector.load %arg2[%c0_1, %c0_2] : memref<128x128xbf16, #tpu.memory_space<vmem>>, vector<128x128xbf16>
    %cst = arith.constant dense<0.000000e+00> : vector<256x128xf32>
    %2 = tpu.matmul %0, %1, %cst {dimension_numbers = #tpu.dot_dimension_numbers<[1], [0], [0], [1], [0, 0, 1, 1], [], []>} : vector<256x128xbf16>, vector<128x128xbf16>, vector<256x128xf32> -> vector<256x128xf32>
    %c0_3 = arith.constant 0 : index
    %c0_4 = arith.constant 0 : index
    %3 = vector.load %arg4[%c0_3, %c0_4] : memref<1x128xf32, #tpu.memory_space<vmem>>, vector<1x128xf32>
    %4 = vector.broadcast %3 : vector<1x128xf32> to vector<256x128xf32>
    %5 = arith.addf %2, %4 : vector<256x128xf32>
    %cst_5 = arith.constant 0.000000e+00 : f32
    %6 = vector.broadcast %cst_5 : f32 to vector<256x128xf32>
    %7 = arith.maximumf %5, %6 : vector<256x128xf32>
    %8 = arith.truncf %7 : vector<256x128xf32> to vector<256x128xbf16>
    %c0_6 = arith.constant 0 : index
    %c0_7 = arith.constant 0 : index
    %9 = vector.load %arg3[%c0_6, %c0_7] : memref<128x128xbf16, #tpu.memory_space<vmem>>, vector<128x128xbf16>
    %cst_8 = arith.constant dense<0.000000e+00> : vector<256x128xf32>
    %10 = tpu.matmul %8, %9, %cst_8 {dimension_numbers = #tpu.dot_dimension_numbers<[1], [0], [0], [1], [0, 0, 1, 1], [], []>} : vector<256x128xbf16>, vector<128x128xbf16>, vector<256x128xf32> -> vector<256x128xf32>
    %c0_9 = arith.constant 0 : index
    %c0_10 = arith.constant 0 : index
    %11 = vector.load %arg6[%c0_9, %c0_10] : memref<256x128xbf16, #tpu.memory_space<vmem>>, vector<256x128xbf16>
    tpu.vector_store %arg6[%c0_9, %c0_10], %8 {strides = array<i32>} : memref<256x128xbf16, #tpu.memory_space<vmem>>, vector<256x128xbf16>,
    %12 = arith.truncf %10 : vector<256x128xf32> to vector<256x128xbf16>
    %c0_11 = arith.constant 0 : index
    %c0_12 = arith.constant 0 : index
    %13 = vector.load %arg5[%c0_11, %c0_12] : memref<256x128xbf16, #tpu.memory_space<vmem>>, vector<256x128xbf16>
    tpu.vector_store %arg5[%c0_11, %c0_12], %12 {strides = array<i32>} : memref<256x128xbf16, #tpu.memory_space<vmem>>, vector<256x128xbf16>,
    %14 = tpu.iota {dimensions = array<i32: 0>} : vector<256x1xi32>
    %c256_i32 = arith.constant 256 : i32
    %15 = arith.muli %arg0, %c256_i32 : i32
    %16 = vector.broadcast %15 : i32 to vector<256x1xi32>
    %17 = arith.addi %14, %16 : vector<256x1xi32>
    %c16_i32 = arith.constant 16 : i32
    %18 = vector.broadcast %c16_i32 : i32 to vector<256x1xi32>
    %19 = arith.cmpi slt, %17, %18 : vector<256x1xi32>
    %20 = arith.extui %19 : vector<256x1xi1> to vector<256x1xi32>
    %21 = arith.sitofp %20 : vector<256x1xi32> to vector<256x1xf32>
    %22 = math.absf %7 : vector<256x128xf32>
    %23 = vector.broadcast %21 : vector<256x1xf32> to vector<256x128xf32>
    %24 = arith.mulf %22, %23 : vector<256x128xf32>
    %25 = vector.shape_cast %24 : vector<256x128xf32> to vector<1x256x128xf32>
    %cst_13 = arith.constant dense<0.000000e+00> : vector<1xf32>
    %26 = vector.multi_reduction <add>, %25, %cst_13 [1, 2] : vector<1x256x128xf32> to vector<1xf32>
    %27 = vector.shape_cast %26 : vector<1xf32> to vector<1x1x1xf32>
    %28 = vector.extract %27[0, 0, 0] : f32 from vector<1x1x1xf32>
    %29 = arith.extf %0 : vector<256x128xbf16> to vector<256x128xf32>
    %30 = arith.subf %29, %10 : vector<256x128xf32>
    %31 = vector.broadcast %21 : vector<256x1xf32> to vector<256x128xf32>
    %32 = arith.mulf %30, %31 : vector<256x128xf32>
    %33 = arith.mulf %32, %32 : vector<256x128xf32>
    %cst_14 = arith.constant dense<0.000000e+00> : vector<256xf32>
    %34 = vector.multi_reduction <add>, %33, %cst_14 [1] : vector<256x128xf32> to vector<256xf32>
    %35 = vector.shape_cast %34 : vector<256xf32> to vector<256x1xf32>
    %36 = math.sqrt %35 : vector<256x1xf32>
    %37 = vector.shape_cast %36 : vector<256x1xf32> to vector<1x256x1xf32>
    %cst_15 = arith.constant dense<0.000000e+00> : vector<1xf32>
    %38 = vector.multi_reduction <add>, %37, %cst_15 [1, 2] : vector<1x256x1xf32> to vector<1xf32>
    %39 = vector.shape_cast %38 : vector<1xf32> to vector<1x1x1xf32>
    %40 = vector.extract %39[0, 0, 0] : f32 from vector<1x1x1xf32>
    %cst_16 = arith.constant 1.000000e+00 : f32
    %41 = vector.broadcast %cst_16 : f32 to vector<1x8x128xf32>
    %42 = vector.broadcast %28 : f32 to vector<1x8x128xf32>
    %43 = arith.mulf %42, %41 : vector<1x8x128xf32>
    %c0_17 = arith.constant 0 : index
    %c0_18 = arith.constant 0 : index
    %c0_19 = arith.constant 0 : index
    %44 = vector.load %arg7[%c0_17, %c0_18, %c0_19] : memref<1x8x128xf32, #tpu.memory_space<vmem>>, vector<1x8x128xf32>
    tpu.vector_store %arg7[%c0_17, %c0_18, %c0_19], %43 {strides = array<i32>} : memref<1x8x128xf32, #tpu.memory_space<vmem>>, vector<1x8x128xf32>,
    %45 = vector.broadcast %40 : f32 to vector<1x8x128xf32>
    %46 = arith.mulf %45, %41 : vector<1x8x128xf32>
    %c0_20 = arith.constant 0 : index
    %c0_21 = arith.constant 0 : index
    %c0_22 = arith.constant 0 : index
    %47 = vector.load %arg8[%c0_20, %c0_21, %c0_22] : memref<1x8x128xf32, #tpu.memory_space<vmem>>, vector<1x8x128xf32>
    tpu.vector_store %arg8[%c0_20, %c0_21, %c0_22], %46 {strides = array<i32>} : memref<1x8x128xf32, #tpu.memory_space<vmem>>, vector<1x8x128xf32>,
    return
  }
  func.func @transform_0(%arg0: i32) -> (i32, i32) {
    %c0_i32 = arith.constant 0 : i32
    %c0_i32_0 = arith.constant 0 : i32
    return %arg0, %c0_i32 : i32, i32
  }
  func.func @transform_1(%arg0: i32) -> (i32, i32) {
    %c0_i32 = arith.constant 0 : i32
    %c0_i32_0 = arith.constant 0 : i32
    %c0_i32_1 = arith.constant 0 : i32
    return %c0_i32, %c0_i32_0 : i32, i32
  }
  func.func @transform_2(%arg0: i32) -> (i32, i32) {
    %c0_i32 = arith.constant 0 : i32
    %c0_i32_0 = arith.constant 0 : i32
    %c0_i32_1 = arith.constant 0 : i32
    return %c0_i32, %c0_i32_0 : i32, i32
  }
  func.func @transform_3(%arg0: i32) -> (i32, i32) {
    %c0_i32 = arith.constant 0 : i32
    %c0_i32_0 = arith.constant 0 : i32
    %c0_i32_1 = arith.constant 0 : i32
    return %c0_i32, %c0_i32_0 : i32, i32
  }
  func.func @transform_4(%arg0: i32) -> (i32, i32) {
    %c0_i32 = arith.constant 0 : i32
    %c0_i32_0 = arith.constant 0 : i32
    return %arg0, %c0_i32 : i32, i32
  }
  func.func @transform_5(%arg0: i32) -> (i32, i32) {
    %c0_i32 = arith.constant 0 : i32
    %c0_i32_0 = arith.constant 0 : i32
    return %arg0, %c0_i32 : i32, i32
  }
  func.func @transform_6(%arg0: i32) -> (i32, i32, i32) {
    %c0_i32 = arith.constant 0 : i32
    %c0_i32_0 = arith.constant 0 : i32
    %c0_i32_1 = arith.constant 0 : i32
    return %arg0, %c0_i32, %c0_i32_0 : i32, i32, i32
  }
  func.func @transform_7(%arg0: i32) -> (i32, i32, i32) {
    %c0_i32 = arith.constant 0 : i32
    %c0_i32_0 = arith.constant 0 : i32
    %c0_i32_1 = arith.constant 0 : i32
    return %arg0, %c0_i32, %c0_i32_0 : i32, i32, i32
  }
}

</mosaic_0001>

<bundles_post_ra>
// kernel: sparse_autoencoder_forward.1
= control target key start
LH: loop header
LB: loop body
LE: loop exit
PB: predicated region body
PF: predicated region fallthrough
CT: control target
= control target key end

     0   :  { %vm1558_vm0 = vcmask 7168   ;;  %s3067_s1 = inlined_call_operand.vmem [shape: bf16[128,128], index: 1, kind: input, shape index: {}]   ;;  %s3068_s3 = inlined_call_operand.vmem [shape: f32[1,128], index: 3, kind: input, shape index: {}]   ;;  %s3069_s0 = inlined_call_operand.vmem [shape: bf16[256,128], index: 0, kind: input, shape index: {}]   ;;  %s3070_s2 = inlined_call_operand.vmem [shape: bf16[128,128], index: 2, kind: input, shape index: {}]   ;;  %s3071_s5 = inlined_call_operand.vmem [shape: bf16[256,128], index: 5, kind: output, shape index: {1}]   ;;  %s3072_s4 = inlined_call_operand.vmem [shape: bf16[256,128], index: 4, kind: output, shape index: {0}]   ;;  %s3073_s6 = inlined_call_operand.vmem [shape: f32[1,8,128], index: 6, kind: output, shape index: {2}]   ;;  %s3074_s7 = inlined_call_operand.vmem [shape: f32[1,8,128], index: 7, kind: output, shape index: {3}]  }
   0x1   :  { %v1802_v0 = vld [vmem:[%s3067_s1 + $0x38] sm:$0xff]  ;;  %v1801_v1 = vld [vmem:[%s3067_s1 + $0x30] sm:$0xff]  ;;  %v1800_v2 = vld [vmem:[%s3067_s1 + $0x28] sm:$0xff] }
   0x2   :  { %217 = vmatpush.bf16.msra.mxu0 %v1802_v0  ;;  %2001 = vmatpush.bf16.msra.mxu2 %v1802_v0  ;;  %v1799_v3 = vld [vmem:[%s3067_s1 + $0x20] sm:$0xff]  ;;  %v1798_v4 = vld [vmem:[%s3067_s1 + $0x18] sm:$0xff]  ;;  %v1797_v5 = vld [vmem:[%s3067_s1 + $0x10] sm:$0xff] }
   0x3   :  { %v1796_v6 = vld [vmem:[%s3067_s1 + $0x8] sm:$0xff]  ;;  %v1795_v7 = vld [vmem:[%s3067_s1] sm:$0xff]  ;;  %v1781_v12 = vld [vmem:[%s3069_s0 + $0x10] sm:$0xff] }
   0x4   :  { %v1779_v8 = vld [vmem:[%s3069_s0] sm:$0xff]  ;;  %v1780_v10 = vld [vmem:[%s3069_s0 + $0x8] sm:$0xff]  ;;  %v1789_v13 = vld [vmem:[%s3069_s0 + $0x50] sm:$0xff] }
   0x5   :  { %v1787_v9 = vld [vmem:[%s3069_s0 + $0x40] sm:$0xff]  ;;  %v1788_v11 = vld [vmem:[%s3069_s0 + $0x48] sm:$0xff]  ;;  %v1782_v14 = vld [vmem:[%s3069_s0 + $0x18] sm:$0xff] }
   0x6   :  { %218 = vmatpush.bf16.msra.mxu0 %v1801_v1  ;;  %2002 = vmatpush.bf16.msra.mxu2 %v1801_v1  ;;  %v1790_v15 = vld [vmem:[%s3069_s0 + $0x58] sm:$0xff]  ;;  %v1783_v16 = vld [vmem:[%s3069_s0 + $0x20] sm:$0xff]  ;;  %v1784_v18 = vld [vmem:[%s3069_s0 + $0x28] sm:$0xff] }
   0x7   :  { %v1791_v17 = vld [vmem:[%s3069_s0 + $0x60] sm:$0xff]  ;;  %v1792_v19 = vld [vmem:[%s3069_s0 + $0x68] sm:$0xff]  ;;  %v1810_v20 = vld [vmem:[%s3070_s2 + $0x38] sm:$0xff] }
   0x8   :  { %530 = vmatpush.bf16.msra.mxu1 %v1810_v20  ;;  %v1809_v21 = vld [vmem:[%s3070_s2 + $0x30] sm:$0xff]  ;;  %2009 = vmatpush.bf16.msra.mxu3 %v1810_v20  ;;  %v1808_v22 = vld [vmem:[%s3070_s2 + $0x28] sm:$0xff]  ;;  %v1807_v23 = vld [vmem:[%s3070_s2 + $0x20] sm:$0xff] }
   0x9   :  { %v1785_v24 = vld [vmem:[%s3069_s0 + $0x30] sm:$0xff]  ;;  %v1806_v26 = vld [vmem:[%s3070_s2 + $0x18] sm:$0xff]  ;;  %v1804_v28 = vld [vmem:[%s3070_s2 + $0x8] sm:$0xff] }
   0xa   :  { %219 = vmatpush.bf16.msra.mxu0 %v1800_v2  ;;  %2003 = vmatpush.bf16.msra.mxu2 %v1800_v2  ;;  %v1793_v25 = vld [vmem:[%s3069_s0 + $0x70] sm:$0xff]  ;;  %v1803_v29 = vld [vmem:[%s3070_s2] sm:$0xff]  ;;  %v1786_v30 = vld [vmem:[%s3069_s0 + $0x38] sm:$0xff] }
   0xb   :  { %v1805_v27 = vld [vmem:[%s3070_s2 + $0x10] sm:$0xff]  ;;  %v1794_v31 = vld [vmem:[%s3069_s0 + $0x78] sm:$0xff]  ;;  %v2225_v32 = vld [vmem:[%s3068_s3] ss:$0 sm:$0xff] }
   0xc   :  { %531 = vmatpush.bf16.msra.mxu1 %v1809_v21  ;;  %2010 = vmatpush.bf16.msra.mxu3 %v1809_v21 }
   0xe   :  { %220 = vmatpush.bf16.msra.mxu0 %v1799_v3  ;;  %2004 = vmatpush.bf16.msra.mxu2 %v1799_v3 }
  0x10   :  { %532 = vmatpush.bf16.msra.mxu1 %v1808_v22  ;;  %2011 = vmatpush.bf16.msra.mxu3 %v1808_v22 }
  0x12   :  { %221 = vmatpush.bf16.msra.mxu0 %v1798_v4  ;;  %2005 = vmatpush.bf16.msra.mxu2 %v1798_v4 }
  0x14   :  { %533 = vmatpush.bf16.msra.mxu1 %v1807_v23  ;;  %2012 = vmatpush.bf16.msra.mxu3 %v1807_v23 }
  0x16   :  { %222 = vmatpush.bf16.msra.mxu0 %v1797_v5  ;;  %2006 = vmatpush.bf16.msra.mxu2 %v1797_v5 }
  0x18   :  { %534 = vmatpush.bf16.msra.mxu1 %v1806_v26  ;;  %2013 = vmatpush.bf16.msra.mxu3 %v1806_v26 }
  0x1a   :  { %223 = vmatpush.bf16.msra.mxu0 %v1796_v6  ;;  %2007 = vmatpush.bf16.msra.mxu2 %v1796_v6 }
  0x1c   :  { %535 = vmatpush.bf16.msra.mxu1 %v1805_v27  ;;  %2014 = vmatpush.bf16.msra.mxu3 %v1805_v27 }
  0x1e   :  { %224 = vmatpush.bf16.msra.mxu0 %v1795_v7  ;;  %2008 = vmatpush.bf16.msra.mxu2 %v1795_v7 }
  0x20   :  { %536 = vmatpush.bf16.msra.mxu1 %v1804_v28  ;;  %2015 = vmatpush.bf16.msra.mxu3 %v1804_v28 }
  0x21   :  { %225 = vmatmul.bf16.vlgmr.msra.gmra.mxu0 %v1779_v8  ;;  %265 = vmatmul.bf16.vlgmr.msra.gmra.mxu2 %v1787_v9 }
  0x24   :  { %537 = vmatpush.bf16.msra.mxu1 %v1803_v29  ;;  %2016 = vmatpush.bf16.msra.mxu3 %v1803_v29 }
  0x31   :  { %230 = vmatmul.bf16.gmra.mxu0 %v1780_v10  ;;  %270 = vmatmul.bf16.gmra.mxu2 %v1788_v11 }
  0x41   :  { %235 = vmatmul.bf16.gmra.mxu0 %v1781_v12  ;;  %275 = vmatmul.bf16.gmra.mxu2 %v1789_v13 }
  0x51   :  { %240 = vmatmul.bf16.gmra.mxu0 %v1782_v14  ;;  %280 = vmatmul.bf16.gmra.mxu2 %v1790_v15 }
  0x61   :  { %245 = vmatmul.bf16.gmra.mxu0 %v1783_v16  ;;  %285 = vmatmul.bf16.gmra.mxu2 %v1791_v17 }
  0x71   :  { %250 = vmatmul.bf16.gmra.mxu0 %v1784_v18  ;;  %290 = vmatmul.bf16.gmra.mxu2 %v1792_v19 }
  0x81   :  { %255 = vmatmul.bf16.gmra.mxu0 %v1785_v24  ;;  %295 = vmatmul.bf16.gmra.mxu2 %v1793_v25 }
  0x91   :  { %260 = vmatmul.bf16.gmra.mxu0 %v1786_v30  ;;  %300 = vmatmul.bf16.gmra.mxu2 %v1794_v31 }
  0x9e   :  { %v226_v33 = vpop.f32.mrf.mxu0 }
  0x9f   :  { %v227_v34 = vadd.f32 %v2225_v32, %v226_v33 }
  0xa1   :  { %v306_v35 = vmax.f32 %v227_v34, 0.0 }
  0xa3   :  { %v338_v40 = vpack.c.bf16 %v306_v35, %v306_v35  ;;  %v878_v43 = vand.u32 2147483647, %v306_v35 }
  0xa4   :  { %v266_v36 = vpop.f32.mrf.mxu2 }
  0xa5   :  { %v267_v37 = vadd.f32 %v2225_v32, %v266_v36  ;;  %v418_v48 = vunpack.c.l.b16 %v338_v40 }
  0xa6   :  { %v228_v38 = vpop.f32.mrf.mxu0 }
  0xa7   :  { %v229_v39 = vadd.f32 %v2225_v32, %v228_v38  ;;  %v2230_v41 = vmax.f32 %v267_v37, 0.0 }
  0xa9   :  { %v307_v42 = vmax.f32 %v229_v39, 0.0  ;;  %v354_v52 = vpack.c.bf16 %v2230_v41, %v2230_v41 }
  0xab   :  { %v1814_v44 = vpack.c.bf16 %v307_v42, %v306_v35  ;;  %v879_v45 = vand.u32 2147483647, %v307_v42  ;;  %v339_v46 = vpack.c.bf16 %v307_v42, %v307_v42  ;;  %v434_v60 = vunpack.c.l.b16 %v354_v52 }
  0xac   :  { %v268_v47 = vpop.f32.mrf.mxu2 }
  0xad   :  { %1815 = vst [vmem:[%s3071_s5] sm:$0xff] %v1814_v44   ;;  %v942_v49 = vadd.f32 %v879_v45, %v878_v43  ;;  %v269_v50 = vadd.f32 %v2225_v32, %v268_v47  ;;  %v419_v51 = vunpack.c.l.b16 %v339_v46 }
  0xae   :  { %v231_v53 = vpop.f32.mrf.mxu0 }
  0xaf   :  { %v2238_v54 = vmax.f32 %v269_v50, 0.0  ;;  %v232_v55 = vadd.f32 %v2225_v32, %v231_v53  ;;  %v450_v56 = vpack.c.b16 %v419_v51, %v418_v48 }
  0xb1   :  { %v1854_v57 = vpack.c.bf16 %v2238_v54, %v2230_v41  ;;  %v308_v58 = vmax.f32 %v232_v55, 0.0  ;;  %538 = vmatmul.bf16.vlgmr.msra.gmra.mxu1 %v450_v56  ;;  %v355_v59 = vpack.c.bf16 %v2238_v54, %v2238_v54 }
  0xb3   :  { %1978 = vst [vmem:[%s3071_s5 + $0x40] sm:$0xff] %v1854_v57   ;;  %v880_v61 = vand.u32 2147483647, %v308_v58  ;;  %v435_v62 = vunpack.c.l.b16 %v355_v59  ;;  %v340_v6 = vpack.c.bf16 %v308_v58, %v308_v58 }
  0xb4   :  { %v271_v63 = vpop.f32.mrf.mxu2 }
  0xb5   :  { %v912_v0 = vmul.f32 0.0, %v880_v61  ;;  %v272_v1 = vadd.f32 %v2225_v32, %v271_v63  ;;  %v458_v2 = vpack.c.b16 %v435_v62, %v434_v60  ;;  %v420_v13 = vunpack.c.l.b16 %v340_v6 }
  0xb6   :  { %v233_v3 = vpop.f32.mrf.mxu0 }
  0xb7   :  { %v943_v4 = vadd.f32 %v942_v49, %v912_v0  ;;  %v234_v5 = vadd.f32 %v2225_v32, %v233_v3  ;;  %578 = vmatmul.bf16.vlgmr.msra.gmra.mxu3 %v458_v2  ;;  %v2250_v7 = vmax.f32 %v272_v1, 0.0 }
  0xb9   :  { %v309_v8 = vmax.f32 %v234_v5, 0.0  ;;  %v356_v17 = vpack.c.bf16 %v2250_v7, %v2250_v7 }
  0xbb   :  { %v1819_v9 = vpack.c.bf16 %v309_v8, %v308_v58  ;;  %v881_v10 = vand.u32 2147483647, %v309_v8  ;;  %v341_v11 = vpack.c.bf16 %v309_v8, %v309_v8  ;;  %v436_v26 = vunpack.c.l.b16 %v356_v17 }
  0xbc   :  { %v273_v12 = vpop.f32.mrf.mxu2 }
  0xbd   :  { %1971 = vst [vmem:[%s3071_s5 + $0x8] sm:$0xff] %v1819_v9   ;;  %v913_v14 = vmul.f32 0.0, %v881_v10  ;;  %v274_v15 = vadd.f32 %v2225_v32, %v273_v12  ;;  %v421_v16 = vunpack.c.l.b16 %v341_v11 }
  0xbe   :  { %v236_v18 = vpop.f32.mrf.mxu0 }
  0xbf   :  { %v944_v19 = vadd.f32 %v943_v4, %v913_v14  ;;  %v2258_v20 = vmax.f32 %v274_v15, 0.0  ;;  %v237_v21 = vadd.f32 %v2225_v32, %v236_v18  ;;  %v451_v22 = vpack.c.b16 %v421_v16, %v420_v13 }
  0xc1   :  { %v1859_v23 = vpack.c.bf16 %v2258_v20, %v2250_v7  ;;  %v310_v24 = vmax.f32 %v237_v21, 0.0  ;;  %543 = vmatmul.bf16.gmra.mxu1 %v451_v22  ;;  %v357_v25 = vpack.c.bf16 %v2258_v20, %v2258_v20 }
  0xc3   :  { %1979 = vst [vmem:[%s3071_s5 + $0x48] sm:$0xff] %v1859_v23   ;;  %v882_v27 = vand.u32 2147483647, %v310_v24  ;;  %v437_v28 = vunpack.c.l.b16 %v357_v25  ;;  %v342_v37 = vpack.c.bf16 %v310_v24, %v310_v24 }
  0xc4   :  { %v276_v29 = vpop.f32.mrf.mxu2 }
  0xc5   :  { %v914_v30 = vmul.f32 0.0, %v882_v27  ;;  %v459_v31 = vpack.c.b16 %v437_v28, %v436_v26  ;;  %v277_v33 = vadd.f32 %v2225_v32, %v276_v29  ;;  %v422_v44 = vunpack.c.l.b16 %v342_v37 }
  0xc6   :  { %v238_v34 = vpop.f32.mrf.mxu0 }
  0xc7   :  { %v945_v35 = vadd.f32 %v944_v19, %v914_v30  ;;  %v239_v36 = vadd.f32 %v2225_v32, %v238_v34  ;;  %583 = vmatmul.bf16.gmra.mxu3 %v459_v31  ;;  %v2270_v39 = vmax.f32 %v277_v33, 0.0 }
  0xc9   :  { %v311_v38 = vmax.f32 %v239_v36, 0.0  ;;  %v358_v49 = vpack.c.bf16 %v2270_v39, %v2270_v39 }
  0xcb   :  { %v1824_v40 = vpack.c.bf16 %v311_v38, %v310_v24  ;;  %v883_v42 = vand.u32 2147483647, %v311_v38  ;;  %v343_v43 = vpack.c.bf16 %v311_v38, %v311_v38  ;;  %v438_v59 = vunpack.c.l.b16 %v358_v49 }
  0xcc   :  { %v278_v45 = vpop.f32.mrf.mxu2 }
  0xcd   :  { %1972 = vst [vmem:[%s3071_s5 + $0x10] sm:$0xff] %v1824_v40   ;;  %v915_v46 = vmul.f32 0.0, %v883_v42  ;;  %v423_v47 = vunpack.c.l.b16 %v343_v43  ;;  %v279_v48 = vadd.f32 %v2225_v32, %v278_v45 }
  0xce   :  { %v241_v50 = vpop.f32.mrf.mxu0 }
  0xcf   :  { %v946_v51 = vadd.f32 %v945_v35, %v915_v46  ;;  %v242_v52 = vadd.f32 %v2225_v32, %v241_v50  ;;  %v452_v53 = vpack.c.b16 %v423_v47, %v422_v44  ;;  %v2279_v55 = vmax.f32 %v279_v48, 0.0 }
  0xd1   :  { %v312_v56 = vmax.f32 %v242_v52, 0.0  ;;  %548 = vmatmul.bf16.gmra.mxu1 %v452_v53  ;;  %v1864_v57 = vpack.c.bf16 %v2279_v55, %v2270_v39  ;;  %v359_v58 = vpack.c.bf16 %v2279_v55, %v2279_v55 }
  0xd3   :  { %v884_v60 = vand.u32 2147483647, %v312_v56  ;;  %1980 = vst [vmem:[%s3071_s5 + $0x50] sm:$0xff] %v1864_v57   ;;  %v439_v61 = vunpack.c.l.b16 %v359_v58  ;;  %v344_v5 = vpack.c.bf16 %v312_v56, %v312_v56 }
  0xd4   :  { %v281_v62 = vpop.f32.mrf.mxu2 }
  0xd5   :  { %v916_v63 = vmul.f32 0.0, %v884_v60  ;;  %v282_v0 = vadd.f32 %v2225_v32, %v281_v62  ;;  %v460_v1 = vpack.c.b16 %v439_v61, %v438_v59  ;;  %v424_v12 = vunpack.c.l.b16 %v344_v5 }
  0xd6   :  { %v243_v2 = vpop.f32.mrf.mxu0 }
  0xd7   :  { %v947_v3 = vadd.f32 %v946_v51, %v916_v63  ;;  %v244_v4 = vadd.f32 %v2225_v32, %v243_v2  ;;  %588 = vmatmul.bf16.gmra.mxu3 %v460_v1  ;;  %v2290_v8 = vmax.f32 %v282_v0, 0.0 }
  0xd9   :  { %v313_v6 = vmax.f32 %v244_v4, 0.0  ;;  %v360_v17 = vpack.c.bf16 %v2290_v8, %v2290_v8 }
  0xdb   :  { %v1829_v9 = vpack.c.bf16 %v313_v6, %v312_v56  ;;  %v885_v10 = vand.u32 2147483647, %v313_v6  ;;  %v345_v11 = vpack.c.bf16 %v313_v6, %v313_v6  ;;  %v440_v27 = vunpack.c.l.b16 %v360_v17 }
  0xdc   :  { %v283_v13 = vpop.f32.mrf.mxu2 }
  0xdd   :  { %1973 = vst [vmem:[%s3071_s5 + $0x18] sm:$0xff] %v1829_v9   ;;  %v917_v14 = vmul.f32 0.0, %v885_v10  ;;  %v425_v15 = vunpack.c.l.b16 %v345_v11  ;;  %v284_v16 = vadd.f32 %v2225_v32, %v283_v13 }
  0xde   :  { %v246_v18 = vpop.f32.mrf.mxu0 }
  0xdf   :  { %v948_v19 = vadd.f32 %v947_v3, %v917_v14  ;;  %v247_v21 = vadd.f32 %v2225_v32, %v246_v18  ;;  %v453_v22 = vpack.c.b16 %v425_v15, %v424_v12  ;;  %v2299_v23 = vmax.f32 %v284_v16, 0.0 }
  0xe1   :  { %v314_v24 = vmax.f32 %v247_v21, 0.0  ;;  %553 = vmatmul.bf16.gmra.mxu1 %v453_v22  ;;  %v1869_v25 = vpack.c.bf16 %v2299_v23, %v2290_v8  ;;  %v361_v26 = vpack.c.bf16 %v2299_v23, %v2299_v23 }
  0xe3   :  { %v886_v28 = vand.u32 2147483647, %v314_v24  ;;  %1981 = vst [vmem:[%s3071_s5 + $0x58] sm:$0xff] %v1869_v25   ;;  %v441_v29 = vunpack.c.l.b16 %v361_v26  ;;  %v346_v38 = vpack.c.bf16 %v314_v24, %v314_v24 }
  0xe4   :  { %v286_v30 = vpop.f32.mrf.mxu2 }
  0xe5   :  { %v918_v31 = vmul.f32 0.0, %v886_v28  ;;  %v287_v33 = vadd.f32 %v2225_v32, %v286_v30  ;;  %v461_v34 = vpack.c.b16 %v441_v29, %v440_v27  ;;  %v426_v46 = vunpack.c.l.b16 %v346_v38 }
  0xe6   :  { %v248_v35 = vpop.f32.mrf.mxu0 }
  0xe7   :  { %v949_v36 = vadd.f32 %v948_v19, %v918_v31  ;;  %v249_v37 = vadd.f32 %v2225_v32, %v248_v35  ;;  %593 = vmatmul.bf16.gmra.mxu3 %v461_v34  ;;  %v2310_v42 = vmax.f32 %v287_v33, 0.0 }
  0xe9   :  { %v315_v40 = vmax.f32 %v249_v37, 0.0  ;;  %v362_v51 = vpack.c.bf16 %v2310_v42, %v2310_v42 }
  0xeb   :  { %v1834_v43 = vpack.c.bf16 %v315_v40, %v314_v24  ;;  %v887_v44 = vand.u32 2147483647, %v315_v40  ;;  %v347_v45 = vpack.c.bf16 %v315_v40, %v315_v40  ;;  %v442_v62 = vunpack.c.l.b16 %v362_v51 }
  0xec   :  { %v288_v47 = vpop.f32.mrf.mxu2 }
  0xed   :  { %1974 = vst [vmem:[%s3071_s5 + $0x20] sm:$0xff] %v1834_v43   ;;  %v919_v48 = vmul.f32 0.0, %v887_v44  ;;  %v427_v49 = vunpack.c.l.b16 %v347_v45  ;;  %v289_v50 = vadd.f32 %v2225_v32, %v288_v47 }
  0xee   :  { %v251_v52 = vpop.f32.mrf.mxu0 }
  0xef   :  { %v950_v53 = vadd.f32 %v949_v36, %v919_v48  ;;  %v252_v56 = vadd.f32 %v2225_v32, %v251_v52  ;;  %v454_v57 = vpack.c.b16 %v427_v49, %v426_v46  ;;  %v2319_v58 = vmax.f32 %v289_v50, 0.0 }
  0xf1   :  { %v316_v59 = vmax.f32 %v252_v56, 0.0  ;;  %558 = vmatmul.bf16.gmra.mxu1 %v454_v57  ;;  %v1874_v60 = vpack.c.bf16 %v2319_v58, %v2310_v42  ;;  %v363_v61 = vpack.c.bf16 %v2319_v58, %v2319_v58 }
  0xf3   :  { %v888_v63 = vand.u32 2147483647, %v316_v59  ;;  %1982 = vst [vmem:[%s3071_s5 + $0x60] sm:$0xff] %v1874_v60   ;;  %v443_v0 = vunpack.c.l.b16 %v363_v61  ;;  %v348_v10 = vpack.c.bf16 %v316_v59, %v316_v59 }
  0xf4   :  { %v291_v1 = vpop.f32.mrf.mxu2 }
  0xf5   :  { %v920_v2 = vmul.f32 0.0, %v888_v63  ;;  %v292_v3 = vadd.f32 %v2225_v32, %v291_v1  ;;  %v462_v4 = vpack.c.b16 %v443_v0, %v442_v62  ;;  %v428_v16 = vunpack.c.l.b16 %v348_v10 }
  0xf6   :  { %v253_v5 = vpop.f32.mrf.mxu0 }
  0xf7   :  { %v951_v6 = vadd.f32 %v950_v53, %v920_v2  ;;  %v254_v9 = vadd.f32 %v2225_v32, %v253_v5  ;;  %598 = vmatmul.bf16.gmra.mxu3 %v462_v4  ;;  %v2330_v12 = vmax.f32 %v292_v3, 0.0 }
  0xf9   :  { %v317_v11 = vmax.f32 %v254_v9, 0.0  ;;  %v364_v22 = vpack.c.bf16 %v2330_v12, %v2330_v12 }
  0xfb   :  { %v1839_v13 = vpack.c.bf16 %v317_v11, %v316_v59  ;;  %v889_v14 = vand.u32 2147483647, %v317_v11  ;;  %v349_v15 = vpack.c.bf16 %v317_v11, %v317_v11  ;;  %v444_v33 = vunpack.c.l.b16 %v364_v22 }
  0xfc   :  { %v293_v17 = vpop.f32.mrf.mxu2  ;;  %v894_v22 = vand.u32 2147483647, %v2230_v41  ;;  %v896_v41 = vand.u32 2147483647, %v2250_v7 }
  0xfd   :  { %1975 = vst [vmem:[%s3071_s5 + $0x28] sm:$0xff] %v1839_v13   ;;  %v921_v18 = vmul.f32 0.0, %v889_v14  ;;  %v429_v19 = vunpack.c.l.b16 %v349_v15  ;;  %v294_v21 = vadd.f32 %v2225_v32, %v293_v17 }
  0xfe   :  { %v256_v24 = vpop.f32.mrf.mxu0 }
  0xff   :  { %v952_v25 = vadd.f32 %v951_v6, %v921_v18  ;;  %v257_v26 = vadd.f32 %v2225_v32, %v256_v24  ;;  %v455_v27 = vpack.c.b16 %v429_v19, %v428_v16  ;;  %v2339_v28 = vmax.f32 %v294_v21, 0.0 }
 0x101   :  { %v318_v29 = vmax.f32 %v257_v26, 0.0  ;;  %563 = vmatmul.bf16.gmra.mxu1 %v455_v27  ;;  %v1879_v30 = vpack.c.bf16 %v2339_v28, %v2330_v12  ;;  %v365_v31 = vpack.c.bf16 %v2339_v28, %v2339_v28  ;;  %v895_v27 = vand.u32 2147483647, %v2238_v54 }
 0x103   :  { %v890_v34 = vand.u32 2147483647, %v318_v29  ;;  %1983 = vst [vmem:[%s3071_s5 + $0x68] sm:$0xff] %v1879_v30   ;;  %v445_v35 = vunpack.c.l.b16 %v365_v31  ;;  %v350_v46 = vpack.c.bf16 %v318_v29, %v318_v29  ;;  %v927_v54 = vmul.f32 0.0, %v895_v27 }
 0x104   :  { %v296_v36 = vpop.f32.mrf.mxu2 }
 0x105   :  { %v922_v37 = vmul.f32 0.0, %v890_v34  ;;  %v297_v38 = vadd.f32 %v2225_v32, %v296_v36  ;;  %v463_v40 = vpack.c.b16 %v445_v35, %v444_v33  ;;  %v430_v52 = vunpack.c.l.b16 %v350_v46 }
 0x106   :  { %v258_v43 = vpop.f32.mrf.mxu0  ;;  %v926_v36 = vmul.f32 0.0, %v894_v22 }
 0x107   :  { %v953_v44 = vadd.f32 %v952_v25, %v922_v37  ;;  %v259_v45 = vadd.f32 %v2225_v32, %v258_v43  ;;  %603 = vmatmul.bf16.gmra.mxu3 %v463_v40  ;;  %v2350_v48 = vmax.f32 %v297_v38, 0.0  ;;  %v897_v43 = vand.u32 2147483647, %v2258_v20 }
 0x108   :  { %v899_v20 = vand.u32 2147483647, %v2279_v55 }
 0x109   :  { %v319_v47 = vmax.f32 %v259_v45, 0.0  ;;  %v366_v60 = vpack.c.bf16 %v2350_v48, %v2350_v48 }
 0x10b   :  { %v1844_v49 = vpack.c.bf16 %v319_v47, %v318_v29  ;;  %v891_v50 = vand.u32 2147483647, %v319_v47  ;;  %v351_v51 = vpack.c.bf16 %v319_v47, %v319_v47  ;;  %v446_v5 = vunpack.c.l.b16 %v366_v60 }
 0x10c   :  { %v298_v53 = vpop.f32.mrf.mxu2  ;;  %v928_v47 = vmul.f32 0.0, %v896_v41  ;;  %v931_v60 = vmul.f32 0.0, %v899_v20 }
 0x10d   :  { %1976 = vst [vmem:[%s3071_s5 + $0x30] sm:$0xff] %v1844_v49   ;;  %v923_v56 = vmul.f32 0.0, %v891_v50  ;;  %v431_v57 = vunpack.c.l.b16 %v351_v51  ;;  %v299_v59 = vadd.f32 %v2225_v32, %v298_v53  ;;  %v898_v49 = vand.u32 2147483647, %v2270_v39  ;;  %v21_v39 = vld [vmem:[%s3069_s0] sm:$0xf] }
 0x10e   :  { %v261_v61 = vpop.f32.mrf.mxu0  ;;  %v929_v51 = vmul.f32 0.0, %v897_v43  ;;  %v982_v55 = vunpack.c.l.bf16 %v21_v39 }
 0x10f   :  { %v954_v62 = vadd.f32 %v953_v44, %v923_v56  ;;  %v262_v63 = vadd.f32 %v2225_v32, %v261_v61  ;;  %v456_v0 = vpack.c.b16 %v431_v57, %v430_v52  ;;  %v2359_v1 = vmax.f32 %v299_v59, 0.0 }
 0x110   :  { %v930_v56 = vmul.f32 0.0, %v898_v49  ;;  %v900_v57 = vand.u32 2147483647, %v2290_v8  ;;  %v901_v61 = vand.u32 2147483647, %v2299_v23  ;;  %v22_v23 = vld [vmem:[%s3069_s0 + $0x4] sm:$0xff]  }
 0x111   :  { %v320_v2 = vmax.f32 %v262_v63, 0.0  ;;  %568 = vmatmul.bf16.gmra.mxu1 %v456_v0  ;;  %v1884_v3 = vpack.c.bf16 %v2359_v1, %v2350_v48  ;;  %v367_v4 = vpack.c.bf16 %v2359_v1, %v2359_v1  ;;  %v902_v0 = vand.u32 2147483647, %v2310_v42 }
 0x112   :  { %v932_v63 = vmul.f32 0.0, %v900_v57  ;;  %v907_v22 = vand.u32 2147483647, %v2359_v1  ;;  %v984_v1 = vunpack.c.h.bf16 %v22_v23 }
 0x113   :  { %v892_v6 = vand.u32 2147483647, %v320_v2  ;;  %1984 = vst [vmem:[%s3071_s5 + $0x70] sm:$0xff] %v1884_v3   ;;  %v447_v9 = vunpack.c.l.b16 %v367_v4  ;;  %v352_v18 = vpack.c.bf16 %v320_v2, %v320_v2  ;;  %v933_v3 = vmul.f32 0.0, %v901_v61 }
 0x114   :  { %v301_v10 = vpop.f32.mrf.mxu2  ;;  %v903_v4 = vand.u32 2147483647, %v2319_v58  ;;  %v983_v58 = vunpack.c.l.bf16 %v22_v23 }
 0x115   :  { %v924_v11 = vmul.f32 0.0, %v892_v6  ;;  %v302_v13 = vadd.f32 %v2225_v32, %v301_v10  ;;  %v464_v14 = vpack.c.b16 %v447_v9, %v446_v5  ;;  %v432_v29 = vunpack.c.l.b16 %v352_v18 }
 0x116   :  { %v263_v15 = vpop.f32.mrf.mxu0  ;;  %v934_v6 = vmul.f32 0.0, %v902_v0  ;;  %v904_v9 = vand.u32 2147483647, %v2330_v12  ;;  %v37_v12 = vld [vmem:[%s3069_s0 + $0x40] sm:$0xff]  }
 0x117   :  { %v955_v16 = vadd.f32 %v954_v62, %v924_v11  ;;  %v264_v17 = vadd.f32 %v2225_v32, %v263_v15  ;;  %608 = vmatmul.bf16.gmra.mxu3 %v464_v14  ;;  %v2370_v21 = vmax.f32 %v302_v13, 0.0  ;;  %v935_v13 = vmul.f32 0.0, %v903_v4 }
 0x118   :  { %v905_v14 = vand.u32 2147483647, %v2339_v28 }
 0x119   :  { %v321_v19 = vmax.f32 %v264_v17, 0.0  ;;  %v368_v35 = vpack.c.bf16 %v2370_v21, %v2370_v21  ;;  %v936_v17 = vmul.f32 0.0, %v904_v9  ;;  %v26_v9 = vld [vmem:[%s3069_s0 + $0x14] sm:$0xff]  }
 0x11b   :  { %v1849_v24 = vpack.c.bf16 %v321_v19, %v320_v2  ;;  %v893_v25 = vand.u32 2147483647, %v321_v19  ;;  %v353_v26 = vpack.c.bf16 %v321_v19, %v321_v19  ;;  %v448_v46 = vunpack.c.l.b16 %v368_v35 }
 0x11c   :  { %v303_v30 = vpop.f32.mrf.mxu2  ;;  %v937_v19 = vmul.f32 0.0, %v905_v14 }
 0x11d   :  { %1977 = vst [vmem:[%s3071_s5 + $0x38] sm:$0xff] %v1849_v24   ;;  %v925_v31 = vmul.f32 0.0, %v893_v25  ;;  %v433_v33 = vunpack.c.l.b16 %v353_v26  ;;  %v304_v34 = vadd.f32 %v2225_v32, %v303_v30  ;;  %v908_v26 = vand.u32 2147483647, %v2370_v21 }
 0x11e   :  { %v998_v30 = vunpack.c.l.bf16 %v37_v12 }
 0x11f   :  { %v956_v37 = vadd.f32 %v955_v16, %v925_v31  ;;  %v457_v38 = vpack.c.b16 %v433_v33, %v432_v29  ;;  %v2381_v40 = vmax.f32 %v304_v34, 0.0  ;;  %v906_v16 = vand.u32 2147483647, %v2350_v48 }
 0x120   :  { %v939_v31 = vmul.f32 0.0, %v907_v22 }
 0x121   :  { %v957_v44 = vadd.f32 %v956_v37, %v926_v36  ;;  %573 = vmatmul.bf16.gmra.mxu1 %v457_v38  ;;  %v1889_v45 = vpack.c.bf16 %v2381_v40, %v2370_v21  ;;  %v369_v32 = vpack.c.bf16 %v2381_v40, %v2381_v40  ;;  %v938_v25 = vmul.f32 0.0, %v906_v16 }
 0x122   :  { %v909_v34 = vand.u32 2147483647, %v2381_v40  ;;  %v940_v37 = vmul.f32 0.0, %v908_v26  ;;  %v24_v40 = vld [vmem:[%s3069_s0 + $0xc] sm:$0xff]  }
 0x123   :  { %v958_v7 = vadd.f32 %v957_v44, %v927_v54  ;;  %1985 = vst [vmem:[%s3071_s5 + $0x78] sm:$0xff] %v1889_v45   ;;  %v449_v50 = vunpack.c.l.b16 %v369_v32  ;;  %v986_v0 = vunpack.c.h.bf16 %v24_v40 }
 0x124   :  { %v941_v54 = vmul.f32 0.0, %v909_v34 }
 0x125   :  { %v959_v52 = vadd.f32 %v958_v7, %v928_v47  ;;  %v465_v53 = vpack.c.b16 %v449_v50, %v448_v46  ;;  %v999_v46 = vunpack.c.h.bf16 %v37_v12  ;;  %v985_v50 = vunpack.c.l.bf16 %v24_v40 }
 0x127   :  { %v960_v59 = vadd.f32 %v959_v52, %v929_v51  ;;  %613 = vmatmul.bf16.gmra.mxu3 %v465_v53  ;;  %v39_v52 = vld [vmem:[%s3069_s0 + $0x48] sm:$0xff]  }
 0x128   :  { %v1000_v57 = vunpack.c.l.bf16 %v39_v52 }
 0x129   :  { %v961_v62 = vadd.f32 %v960_v59, %v930_v56 }
 0x12b   :  { %v962_v2 = vadd.f32 %v961_v62, %v931_v60 }
 0x12d   :  { %v963_v5 = vadd.f32 %v962_v2, %v932_v63 }
 0x12e   :  { %v539_v8 = vpop.f32.mrf.mxu1 }
 0x12f   :  { %v1014_v10 = vsub.f32 %v982_v55, %v539_v8  ;;  %v964_v11 = vadd.f32 %v963_v5, %v933_v3 }
 0x131   :  { %v1078_v42 = vmul.f32 %v1014_v10, %v1014_v10  ;;  %v965_v15 = vadd.f32 %v964_v11, %v934_v6  ;;  %v1001_v6 = vunpack.c.h.bf16 %v39_v52 }
 0x133   :  { %1110 = vadd.xlane.f32.xlu0 %v1078_v42  ;;  %v966_v18 = vadd.f32 %v965_v15, %v935_v13  ;;  %v987_v13 = vunpack.c.l.bf16 %v26_v9 }
 0x135   :  { %v967_v24 = vadd.f32 %v966_v18, %v936_v17 }
 0x136   :  { %v541_v28 = vpop.f32.mrf.mxu1 }
 0x137   :  { %v1894_v27 = vpack.c.bf16 %v541_v28, %v539_v8  ;;  %v1015_v29 = vsub.f32 %v983_v58, %v541_v28  ;;  %v968_v48 = vadd.f32 %v967_v24, %v937_v19  ;;  %v988_v19 = vunpack.c.h.bf16 %v26_v9 }
 0x139   :  { %1895 = vst [vmem:[%s3072_s4] sm:$0xff] %v1894_v27   ;;  %v1079_v33 = vmul.f32 %v1015_v29, %v1015_v29  ;;  %v969_v35 = vadd.f32 %v968_v48, %v938_v25  ;;  %v28_v25 = vld [vmem:[%s3069_s0 + $0x1c] sm:$0xff]  }
 0x13a   :  { %v579_v36 = vpop.f32.mrf.mxu3  ;;  %v989_v29 = vunpack.c.l.bf16 %v28_v25 }
 0x13b   :  { %1112 = vadd.xlane.f32.xlu0 %v1079_v33  ;;  %v1030_v41 = vsub.f32 %v998_v30, %v579_v36  ;;  %v970_v21 = vadd.f32 %v969_v35, %v939_v31 }
 0x13d   :  { %v1062_v38 = vmul.f32 0.0, %v1030_v41  ;;  %v971_v43 = vadd.f32 %v970_v21, %v940_v37  ;;  %v30_v21 = vld [vmem:[%s3069_s0 + $0x24] sm:$0xff]  }
 0x13e   :  { %v544_v44 = vpop.f32.mrf.mxu1 }
 0x13f   :  { %v1016_v45 = vsub.f32 %v984_v1, %v544_v44  ;;  %v1094_v32 = vmul.f32 %v1062_v38, %v1062_v38  ;;  %v2415_v47 = vadd.f32 %v971_v43, %v941_v54  ;;  %v990_v1 = vunpack.c.h.bf16 %v28_v25 }
 0x141   :  { %1142 = vadd.xlane.f32.xlu1 %v1094_v32  ;;  %v1048_v20 = vmul.f32 0.0, %v1016_v45 }
 0x142   :  { %v581_v49 = vpop.f32.mrf.mxu3 }
 0x143   :  { %v1934_v7 = vpack.c.bf16 %v581_v49, %v579_v36  ;;  %v1031_v51 = vsub.f32 %v999_v46, %v581_v49  ;;  %v1080_v61 = vmul.f32 %v1048_v20, %v1048_v20 }
 0x145   :  { %1993 = vst [vmem:[%s3072_s4 + $0x40] sm:$0xff] %v1934_v7   ;;  %v1063_v53 = vmul.f32 0.0, %v1031_v51  ;;  %v992_v51 = vunpack.c.h.bf16 %v30_v21 }
 0x146   :  { %v546_v56 = vpop.f32.mrf.mxu1 }
 0x147   :  { %v1899_v59 = vpack.c.bf16 %v546_v56, %v544_v44  ;;  %v1017_v39 = vsub.f32 %v985_v50, %v546_v56  ;;  %v1095_v60 = vmul.f32 %v1063_v53, %v1063_v53  ;;  %v991_v44 = vunpack.c.l.bf16 %v30_v21  ;;  %v32_v53 = vld [vmem:[%s3069_s0 + $0x2c] sm:$0xff]  }
 0x149   :  { %1986 = vst [vmem:[%s3072_s4 + $0x8] sm:$0xff] %v1899_v59   ;;  %1144 = vadd.xlane.f32.xlu2 %v1095_v60  ;;  %1114 = vadd.xlane.f32.xlu1 %v1080_v61  ;;  %v1049_v2 = vmul.f32 0.0, %v1017_v39  ;;  %v993_v39 = vunpack.c.l.bf16 %v32_v53 }
 0x14a   :  { %v584_v62 = vpop.f32.mrf.mxu3 }
 0x14b   :  { %v1032_v63 = vsub.f32 %v1000_v57, %v584_v62  ;;  %v1081_v5 = vmul.f32 %v1049_v2, %v1049_v2 }
 0x14d   :  { %v1064_v55 = vmul.f32 0.0, %v1032_v63 }
 0x14e   :  { %v549_v3 = vpop.f32.mrf.mxu1 }
 0x14f   :  { %v1018_v4 = vsub.f32 %v986_v0, %v549_v3  ;;  %v1096_v8 = vmul.f32 %v1064_v55, %v1064_v55 }
 0x151   :  { %1116 = vadd.xlane.f32.xlu1 %v1081_v5  ;;  %1146 = vadd.xlane.f32.xlu0 %v1096_v8  ;;  %v1050_v10 = vmul.f32 0.0, %v1018_v4  ;;  %v34_v8 = vld [vmem:[%s3069_s0 + $0x34] sm:$0xff]  }
 0x152   :  { %v586_v11 = vpop.f32.mrf.mxu3 }
 0x153   :  { %v1082_v23 = vmul.f32 %v1050_v10, %v1050_v10  ;;  %v1939_v14 = vpack.c.bf16 %v586_v11, %v584_v62  ;;  %v2432_v42 = vsub.f32 %v1001_v6, %v586_v11  ;;  %v995_v11 = vunpack.c.l.bf16 %v34_v8 }
 0x155   :  { %1118 = vadd.xlane.f32.xlu2 %v1082_v23  ;;  %1994 = vst [vmem:[%s3072_s4 + $0x48] sm:$0xff] %v1939_v14  }
 0x156   :  { %v551_v15 = vpop.f32.mrf.mxu1 }
 0x157   :  { %v1904_v16 = vpack.c.bf16 %v551_v15, %v549_v3  ;;  %v1019_v17 = vsub.f32 %v987_v13, %v551_v15  ;;  %v994_v3 = vunpack.c.h.bf16 %v32_v53 }
 0x159   :  { %1987 = vst [vmem:[%s3072_s4 + $0x10] sm:$0xff] %v1904_v16   ;;  %v1051_v58 = vmul.f32 0.0, %v1019_v17 }
 0x15a   :  { %v2440_v18 = vpop.f32.mrf.mxu3 }
 0x15b   :  { %v1083_v12 = vmul.f32 %v1051_v58, %v1051_v58  ;;  %v41_v58 = vld [vmem:[%s3069_s0 + $0x50] sm:$0xff]  }
 0x15d   :  { %1120 = vadd.xlane.f32.xlu2 %v1083_v12 }
 0x15e   :  { %v554_v22 = vpop.f32.mrf.mxu1 }
 0x15f   :  { %v1020_v24 = vsub.f32 %v988_v19, %v554_v22  ;;  %v996_v19 = vunpack.c.h.bf16 %v34_v8  ;;  %v51_v8 = vld [vmem:[%s3069_s0 + $0x78] sm:$0xff]  }
 0x161   :  { %v1052_v26 = vmul.f32 0.0, %v1020_v24  ;;  %v1002_v24 = vunpack.c.l.bf16 %v41_v58 }
 0x162   :  { %v2445_v28 = vpop.f32.mrf.mxu3 }
 0x163   :  { %v1084_v27 = vmul.f32 %v1052_v26, %v1052_v26  ;;  %v1944_v30 = vpack.c.bf16 %v2445_v28, %v2440_v18  ;;  %v1065_v26 = vmul.f32 0.0, %v2432_v42  ;;  %v45_v42 = vld [vmem:[%s3069_s0 + $0x60] sm:$0xff]  }
 0x165   :  { %1122 = vadd.xlane.f32.xlu0 %v1084_v27  ;;  %1995 = vst [vmem:[%s3072_s4 + $0x50] sm:$0xff] %v1944_v30   ;;  %v36_v30 = vld [vmem:[%s3069_s0 + $0x3c] sm:$0xf] }
 0x166   :  { %v556_v48 = vpop.f32.mrf.mxu1 }
 0x167   :  { %v1909_v31 = vpack.c.bf16 %v556_v48, %v554_v22  ;;  %v1021_v33 = vsub.f32 %v989_v29, %v556_v48  ;;  %v43_v22 = vld [vmem:[%s3069_s0 + $0x58] sm:$0xff]  }
 0x168   :  { %v1004_v27 = vunpack.c.l.bf16 %v43_v22  ;;  %v1005_v21 = vunpack.c.h.bf16 %v43_v22 }
 0x169   :  { %1988 = vst [vmem:[%s3072_s4 + $0x18] sm:$0xff] %v1909_v31   ;;  %v1053_v34 = vmul.f32 0.0, %v1021_v33  ;;  %v1034_v31 = vsub.f32 %v1002_v24, %v2440_v18  ;;  %v1097_v33 = vmul.f32 %v1065_v26, %v1065_v26  ;;  %v1012_v24 = vunpack.c.l.bf16 %v51_v8 }
 0x16a   :  { %v2455_v35 = vpop.f32.mrf.mxu3 }
 0x16b   :  { %v1085_v36 = vmul.f32 %v1053_v34, %v1053_v34  ;;  %v1066_v18 = vmul.f32 0.0, %v1034_v31 }
 0x16d   :  { %1124 = vadd.xlane.f32.xlu1 %v1085_v36  ;;  %v1036_v36 = vsub.f32 %v1004_v27, %v2455_v35 }
 0x16e   :  { %v559_v41 = vpop.f32.mrf.mxu1 }
 0x16f   :  { %v1022_v37 = vsub.f32 %v990_v1, %v559_v41 }
 0x171   :  { %v1054_v38 = vmul.f32 0.0, %v1022_v37 }
 0x172   :  { %v2460_v54 = vpop.f32.mrf.mxu3 }
 0x173   :  { %v1086_v43 = vmul.f32 %v1054_v38, %v1054_v38  ;;  %v1949_v45 = vpack.c.bf16 %v2460_v54, %v2455_v35  ;;  %v1068_v35 = vmul.f32 0.0, %v1036_v36 }
 0x175   :  { %1126 = vadd.xlane.f32.xlu2 %v1086_v43  ;;  %1996 = vst [vmem:[%s3072_s4 + $0x58] sm:$0xff] %v1949_v45   ;;  %v1007_v43 = vunpack.c.h.bf16 %v45_v42 }
 0x176   :  { %v561_v32 = vpop.f32.mrf.mxu1 }
 0x177   :  { %v1914_v46 = vpack.c.bf16 %v561_v32, %v559_v41  ;;  %v1023_v40 = vsub.f32 %v991_v44, %v561_v32  ;;  %v997_v41 = vunpack.c.l.bf16 %v36_v30  ;;  %v1003_v32 = vunpack.c.h.bf16 %v41_v58 }
 0x179   :  { %1989 = vst [vmem:[%s3072_s4 + $0x20] sm:$0xff] %v1914_v46   ;;  %v1055_v49 = vmul.f32 0.0, %v1023_v40  ;;  %v1037_v40 = vsub.f32 %v1005_v21, %v2460_v54  ;;  %v1035_v53 = vsub.f32 %v1003_v32, %v2445_v28 }
 0x17a   :  { %v2470_v7 = vpop.f32.mrf.mxu3 }
 0x17b   :  { %v1087_v50 = vmul.f32 %v1055_v49, %v1055_v49  ;;  %v1069_v54 = vmul.f32 0.0, %v1037_v40 }
 0x17d   :  { %1128 = vadd.xlane.f32.xlu0 %v1087_v50 }
 0x17e   :  { %v564_v20 = vpop.f32.mrf.mxu1 }
 0x17f   :  { %v1024_v52 = vsub.f32 %v992_v51, %v564_v20  ;;  %v1100_v51 = vmul.f32 %v1068_v35, %v1068_v35 }
 0x181   :  { %v1056_v56 = vmul.f32 0.0, %v1024_v52 }
 0x182   :  { %v2475_v57 = vpop.f32.mrf.mxu3 }
 0x183   :  { %v1088_v59 = vmul.f32 %v1056_v56, %v1056_v56  ;;  %v1954_v60 = vpack.c.bf16 %v2475_v57, %v2470_v7  ;;  %v1039_v50 = vsub.f32 %v1007_v43, %v2475_v57  ;;  %v47_v56 = vld [vmem:[%s3069_s0 + $0x68] sm:$0xff]  }
 0x185   :  { %1130 = vadd.xlane.f32.xlu1 %v1088_v59  ;;  %1997 = vst [vmem:[%s3072_s4 + $0x60] sm:$0xff] %v1954_v60   ;;  %v49_v59 = vld [vmem:[%s3069_s0 + $0x70] sm:$0xff]   ;;  %v1071_v57 = vmul.f32 0.0, %v1039_v50 }
 0x186   :  { %v566_v61 = vpop.f32.mrf.mxu1  ;;  %v1010_v60 = vunpack.c.l.bf16 %v49_v59 }
 0x187   :  { %v1919_v62 = vpack.c.bf16 %v566_v61, %v564_v20  ;;  %v1025_v63 = vsub.f32 %v993_v39, %v566_v61  ;;  %v1098_v20 = vmul.f32 %v1066_v18, %v1066_v18  ;;  %v1008_v39 = vunpack.c.l.bf16 %v47_v56 }
 0x188   :  { %v1006_v61 = vunpack.c.l.bf16 %v45_v42 }
 0x189   :  { %1990 = vst [vmem:[%s3072_s4 + $0x28] sm:$0xff] %v1919_v62   ;;  %v1057_v0 = vmul.f32 0.0, %v1025_v63  ;;  %v1067_v62 = vmul.f32 0.0, %v1035_v53  ;;  %v1101_v63 = vmul.f32 %v1069_v54, %v1069_v54 }
 0x18a   :  { %v2485_v2 = vpop.f32.mrf.mxu3 }
 0x18b   :  { %v1089_v55 = vmul.f32 %v1057_v0, %v1057_v0  ;;  %v1040_v28 = vsub.f32 %v1008_v39, %v2485_v2 }
 0x18d   :  { %1132 = vadd.xlane.f32.xlu2 %v1089_v55 }
 0x18e   :  { %v569_v4 = vpop.f32.mrf.mxu1 }
 0x18f   :  { %v1026_v5 = vsub.f32 %v994_v3, %v569_v4  ;;  %v1103_v3 = vmul.f32 %v1071_v57, %v1071_v57 }
 0x191   :  { %v1058_v6 = vmul.f32 0.0, %v1026_v5  ;;  %v1038_v5 = vsub.f32 %v1006_v61, %v2470_v7 }
 0x192   :  { %v2490_v9 = vpop.f32.mrf.mxu3 }
 0x193   :  { %v1090_v10 = vmul.f32 %v1058_v6, %v1058_v6  ;;  %v1959_v23 = vpack.c.bf16 %v2490_v9, %v2485_v2  ;;  %v1099_v6 = vmul.f32 %v1067_v62, %v1067_v62 }
 0x195   :  { %1134 = vadd.xlane.f32.xlu0 %v1090_v10  ;;  %1998 = vst [vmem:[%s3072_s4 + $0x68] sm:$0xff] %v1959_v23   ;;  %v1011_v10 = vunpack.c.h.bf16 %v49_v59  ;;  %v1072_v23 = vmul.f32 0.0, %v1040_v28 }
 0x196   :  { %v571_v13 = vpop.f32.mrf.mxu1 }
 0x197   :  { %v1924_v14 = vpack.c.bf16 %v571_v13, %v569_v4  ;;  %v1027_v15 = vsub.f32 %v995_v11, %v571_v13  ;;  %v1013_v11 = vunpack.c.h.bf16 %v51_v8  ;;  %v1009_v13 = vunpack.c.h.bf16 %v47_v56 }
 0x199   :  { %1991 = vst [vmem:[%s3072_s4 + $0x30] sm:$0xff] %v1924_v14   ;;  %v1059_v16 = vmul.f32 0.0, %v1027_v15  ;;  %v1070_v14 = vmul.f32 0.0, %v1038_v5  ;;  %v1041_v58 = vsub.f32 %v1009_v13, %v2490_v9 }
 0x19a   :  { %v609_v17 = vpop.f32.mrf.mxu3 }
 0x19b   :  { %v1091_v12 = vmul.f32 %v1059_v16, %v1059_v16  ;;  %v1042_v55 = vsub.f32 %v1010_v60, %v609_v17 }
 0x19d   :  { %1136 = vadd.xlane.f32.xlu1 %v1091_v12  ;;  %v1074_v2 = vmul.f32 0.0, %v1042_v55  ;;  %v1102_v12 = vmul.f32 %v1070_v14, %v1070_v14 }
 0x19e   :  { %v574_v25 = vpop.f32.mrf.mxu1 }
 0x19f   :  { %v1028_v29 = vsub.f32 %v996_v19, %v574_v25  ;;  %v1106_v16 = vmul.f32 %v1074_v2, %v1074_v2 }
 0x1a1   :  { %v1060_v48 = vmul.f32 0.0, %v1028_v29 }
 0x1a2   :  { %v611_v34 = vpop.f32.mrf.mxu3 }
 0x1a3   :  { %v1092_v1 = vmul.f32 %v1060_v48, %v1060_v48  ;;  %v1964_v37 = vpack.c.bf16 %v611_v34, %v609_v17  ;;  %v1043_v15 = vsub.f32 %v1011_v10, %v611_v34  ;;  %v1104_v17 = vmul.f32 %v1072_v23, %v1072_v23 }
 0x1a5   :  { %1148 = vadd.xlane.f32.xlu1 %v1097_v33  ;;  %1138 = vadd.xlane.f32.xlu2 %v1092_v1  ;;  %1999 = vst [vmem:[%s3072_s4 + $0x70] sm:$0xff] %v1964_v37   ;;  %v1075_v22 = vmul.f32 0.0, %v1043_v15 }
 0x1a6   :  { %v576_v38 = vpop.f32.mrf.mxu1  ;;  %v2539_v31 = vpop.xlane.xlu0 %1110 }
 0x1a7   :  { %v1929_v44 = vpack.c.bf16 %v576_v38, %v574_v25  ;;  %v1029_v45 = vsub.f32 %v997_v41, %v576_v38  ;;  %v1073_v25 = vmul.f32 0.0, %v1041_v58  ;;  %v1107_v27 = vmul.f32 %v1075_v22, %v1075_v22 }
 0x1a8   :  { %2022 = vrsqrt.f32 %v2539_v31  ;;  %vm1181_vm1 = vcmp.eq.f32.partialorder %v2539_v31, inf  ;;  %vm1183_vm3 = vcmp.eq.f32.partialorder %v2539_v31, 0.0  ;;  %v1184_v14 = vand.u32 2147483648, %v2539_v31 }
 0x1a9   :  { %1992 = vst [vmem:[%s3072_s4 + $0x38] sm:$0xff] %v1929_v44   ;;  %v1061_v46 = vmul.f32 0.0, %v1029_v45  ;;  %v1105_v30 = vmul.f32 %v1073_v25, %v1073_v25 }
 0x1aa   :  { %v614_v49 = vpop.f32.mrf.mxu3 }
 0x1ab   :  { %v1093_v52 = vmul.f32 %v1061_v46, %v1061_v46  ;;  %v1044_v29 = vsub.f32 %v1012_v24, %v614_v49 }
 0x1ad   :  { %1154 = vadd.xlane.f32.xlu1 %v1100_v51  ;;  %1150 = vadd.xlane.f32.xlu2 %v1098_v20  ;;  %v1076_v48 = vmul.f32 0.0, %v1044_v29 }
 0x1ae   :  { %1140 = vadd.xlane.f32.xlu0 %v1093_v52  ;;  %v2544_v34 = vpop.xlane.xlu0 %1112  ;;  %v2023_v1 = vpop.eup %2022 }
 0x1af   :  { %v1108_v33 = vmul.f32 %v1076_v48, %v1076_v48  ;;  %2024 = vrsqrt.f32 %v2544_v34  ;;  %v1175_v42 = vmul.f32 %v2023_v1, %v2539_v31  ;;  %vm1193_vm2 = vcmp.eq.f32.partialorder %v2544_v34, inf }
 0x1b0   :  { %vm1195_vm4 = vcmp.eq.f32.partialorder %v2544_v34, 0.0  ;;  %v1196_v22 = vand.u32 2147483648, %v2544_v34 }
 0x1b2   :  { %v616_v0 = vpop.f32.mrf.mxu3 }
 0x1b3   :  { %v1969_v4 = vpack.c.bf16 %v616_v0, %v614_v49  ;;  %v1045_v7 = vsub.f32 %v1013_v11, %v616_v0 }
 0x1b4   :  { %v2542_v9 = vpop.xlane.xlu1 %1142 }
 0x1b5   :  { %1160 = vadd.xlane.f32.xlu1 %v1103_v3  ;;  %1156 = vadd.xlane.f32.xlu2 %v1101_v63  ;;  %2000 = vst [vmem:[%s3072_s4 + $0x78] sm:$0xff] %v1969_v4   ;;  %v1077_v19 = vmul.f32 0.0, %v1045_v7  ;;  %v2025_v37 = vpop.eup %2024  ;;  %2026 = vrsqrt.f32 %v2542_v9  ;;  %vm1373_vm5 = vcmp.eq.f32.partialorder %v2542_v9, inf  ;;  %vm1375_vm6 = vcmp.eq.f32.partialorder %v2542_v9, 0.0 }
 0x1b6   :  { %1152 = vadd.xlane.f32.xlu0 %v1099_v6  ;;  %v1187_v21 = vmul.f32 %v2025_v37, %v2544_v34 }
 0x1b7   :  { %v1109_v26 = vmul.f32 %v1077_v19, %v1077_v19 }
 0x1b8   :  { %v1188_v18 = vmul.f32 %v2025_v37, %v1187_v21 }
 0x1ba   :  { %v1189_v32 = vmul.f32 0.5, %v1188_v18 }
 0x1bb   :  { %v2027_v35 = vpop.eup %2026 }
 0x1bc   :  { %v2548_v36 = vpop.xlane.xlu2 %1144  ;;  %v2550_v41 = vpop.xlane.xlu1 %1114  ;;  %v1367_v40 = vmul.f32 %v2027_v35, %v2542_v9  ;;  %v1190_v50 = vsub.f32 1.5, %v1189_v32 }
 0x1bd   :  { %1166 = vadd.xlane.f32.xlu1 %v1106_v16  ;;  %1162 = vadd.xlane.f32.xlu2 %v1104_v17  ;;  %2028 = vrsqrt.f32 %v2550_v41  ;;  %vm1385_vm7 = vcmp.eq.f32.partialorder %v2548_v36, inf  ;;  %vm1205_vm8 = vcmp.eq.f32.partialorder %v2550_v41, inf  ;;  %vm1207_vm9 = vcmp.eq.f32.partialorder %v2550_v41, 0.0 }
 0x1be   :  { %1158 = vadd.xlane.f32.xlu0 %v1102_v12  ;;  %2030 = vrsqrt.f32 %v2548_v36  ;;  %v1368_v56 = vmul.f32 %v2027_v35, %v1367_v40  ;;  %v1191_v39 = vmul.f32 %v2025_v37, %v1190_v50  ;;  %v1388_v40 = vand.u32 2147483648, %v2548_v36 }
 0x1bf   :  { %vm1387_vm10 = vcmp.eq.f32.partialorder %v2548_v36, 0.0 }
 0x1c0   :  { %v1369_v0 = vmul.f32 0.5, %v1368_v56  ;;  %v1192_v55 = vmul.f32 %v1191_v39, %v2544_v34 }
 0x1c2   :  { %v1370_v2 = vsub.f32 1.5, %v1369_v0  ;;  %v1194_v15 = vsel %vm1193_vm2, %v2544_v34, %v1192_v55 }
 0x1c3   :  { %v2566_v49 = vpop.eup %2028 }
 0x1c4   :  { %v2558_v43 = vpop.xlane.xlu1 %1116  ;;  %v2560_v45 = vpop.xlane.xlu0 %1146  ;;  %v1199_v59 = vmul.f32 %v2566_v49, %v2550_v41 }
 0x1c5   :  { %1172 = vadd.xlane.f32.xlu1 %v1109_v26  ;;  %1168 = vadd.xlane.f32.xlu2 %v1107_v27  ;;  %2032 = vrsqrt.f32 %v2558_v43  ;;  %v2570_v20 = vpop.eup %2030  ;;  %v1371_v26 = vmul.f32 %v2027_v35, %v1370_v2  ;;  %vm1217_vm11 = vcmp.eq.f32.partialorder %v2558_v43, inf  ;;  %vm1219_vm12 = vcmp.eq.f32.partialorder %v2558_v43, 0.0 }
 0x1c6   :  { %1164 = vadd.xlane.f32.xlu0 %v1105_v30  ;;  %v1379_v57 = vmul.f32 %v2570_v20, %v2548_v36  ;;  %v1200_v28 = vmul.f32 %v2566_v49, %v1199_v59  ;;  %v1197_v30 = vsel %vm1195_vm4, %v1196_v22, %v1194_v15  ;;  %v1220_v2 = vand.u32 2147483648, %v2558_v43 }
 0x1c7   :  { %v1560_v18 = vsel %vm1558_vm0, %v1197_v30, 0.0  ;;  %vm1397_vm14 = vcmp.eq.f32.partialorder %v2560_v45, inf }
 0x1c8   :  { %v2555_v38 = vpop.xlane.xlu2 %1118  ;;  %v1380_v5 = vmul.f32 %v2570_v20, %v1379_v57  ;;  %v1201_v23 = vmul.f32 0.5, %v1200_v28 }
 0x1c9   :  { %2034 = vrsqrt.f32 %v2555_v38  ;;  %vm1229_vm13 = vcmp.eq.f32.partialorder %v2555_v38, inf  ;;  %vm1231_vm15 = vcmp.eq.f32.partialorder %v2555_v38, 0.0 }
 0x1ca   :  { %2036 = vrsqrt.f32 %v2560_v45  ;;  %v1381_v17 = vmul.f32 0.5, %v1380_v5  ;;  %v1202_v27 = vsub.f32 1.5, %v1201_v23 }
 0x1cb   :  { %v2572_v52 = vpop.eup %2032 }
 0x1cc   :  { %v1211_v61 = vmul.f32 %v2572_v52, %v2558_v43  ;;  %v1203_v35 = vmul.f32 %v2566_v49, %v1202_v27  ;;  %v1208_v49 = vand.u32 2147483648, %v2550_v41 }
 0x1cd   :  { %973 = vadd.xlane.f32.xlu2 %v2415_v47  ;;  %v1176_v47 = vmul.f32 %v2023_v1, %v1175_v42  ;;  %v1376_v42 = vand.u32 2147483648, %v2542_v9 }
 0x1ce   :  { %1170 = vadd.xlane.f32.xlu0 %v1108_v33  ;;  %v1212_v6 = vmul.f32 %v2572_v52, %v1211_v61  ;;  %v1382_v33 = vsub.f32 1.5, %v1381_v17  ;;  %v1204_v55 = vmul.f32 %v1203_v35, %v2550_v41 }
 0x1cf   :  { %v1177_v44 = vmul.f32 0.5, %v1176_v47  ;;  %v2580_v60 = vpop.eup %2034 }
 0x1d0   :  { %v2568_v51 = vpop.xlane.xlu2 %1120  ;;  %v1223_v3 = vmul.f32 %v2580_v60, %v2555_v38  ;;  %v2594_v4 = vpop.eup %2036  ;;  %v1213_v24 = vmul.f32 0.5, %v1212_v6  ;;  %v1383_v59 = vmul.f32 %v2570_v20, %v1382_v33 }
 0x1d1   :  { %v1178_v46 = vsub.f32 1.5, %v1177_v44  ;;  %2038 = vrsqrt.f32 %v2568_v51  ;;  %v1391_v58 = vmul.f32 %v2594_v4, %v2560_v45  ;;  %v1372_v44 = vmul.f32 %v1371_v26, %v2542_v9 }
 0x1d2   :  { %v1224_v7 = vmul.f32 %v2580_v60, %v1223_v3  ;;  %v1214_v21 = vsub.f32 1.5, %v1213_v24  ;;  %vm1241_vm2 = vcmp.eq.f32.partialorder %v2568_v51, inf  ;;  %vm1243_vm4 = vcmp.eq.f32.partialorder %v2568_v51, 0.0 }
 0x1d3   :  { %v1179_v53 = vmul.f32 %v2023_v1, %v1178_v46  ;;  %v1392_v1 = vmul.f32 %v2594_v4, %v1391_v58  ;;  %v1374_v20 = vsel %vm1373_vm5, %v2542_v9, %v1372_v44  ;;  %v1206_v58 = vsel %vm1205_vm8, %v2550_v41, %v1204_v55 }
 0x1d4   :  { %v1225_v48 = vmul.f32 0.5, %v1224_v7  ;;  %v1377_v15 = vsel %vm1375_vm6, %v1376_v42, %v1374_v20  ;;  %v1209_v42 = vsel %vm1207_vm9, %v1208_v49, %v1206_v58 }
 0x1d5   :  { %v1180_v63 = vmul.f32 %v1179_v53, %v2539_v31  ;;  %v1393_v39 = vmul.f32 0.5, %v1392_v1 }
 0x1d6   :  { %v1226_v50 = vsub.f32 1.5, %v1225_v48 }
 0x1d7   :  { %v2597_v8 = vpop.eup %2038  ;;  %v1182_v11 = vsel %vm1181_vm1, %v2539_v31, %v1180_v63  ;;  %v1215_v63 = vmul.f32 %v2572_v52, %v1214_v21  ;;  %v1394_v23 = vsub.f32 1.5, %v1393_v39  ;;  %v1232_v21 = vand.u32 2147483648, %v2555_v38 }
 0x1d8   :  { %v2577_v54 = vpop.xlane.xlu0 %1122  ;;  %v1235_v12 = vmul.f32 %v2597_v8, %v2568_v51  ;;  %v1185_v19 = vsel %vm1183_vm3, %v1184_v14, %v1182_v11  ;;  %v1227_v52 = vmul.f32 %v2580_v60, %v1226_v50  ;;  %v1384_v11 = vmul.f32 %v1383_v59, %v2548_v36 }
 0x1d9   :  { %2040 = vrsqrt.f32 %v2577_v54  ;;  %v1559_v37 = vsel %vm1558_vm0, %v1185_v19, 0.0  ;;  %v1216_v7 = vmul.f32 %v1215_v63, %v2558_v43  ;;  %v1395_v48 = vmul.f32 %v2594_v4, %v1394_v23 }
 0x1da   :  { %v1236_v34 = vmul.f32 %v2597_v8, %v1235_v12  ;;  %v2652_v61 = vadd.f32 %v1560_v18, %v1559_v37  ;;  %v1400_v12 = vand.u32 2147483648, %v2560_v45  ;;  %v1228_v24 = vmul.f32 %v1227_v52, %v2555_v38 }
 0x1db   :  { %v1386_v30 = vsel %vm1385_vm7, %v2548_v36, %v1384_v11  ;;  %v1218_v1 = vsel %vm1217_vm11, %v2558_v43, %v1216_v7  ;;  %vm1399_vm1 = vcmp.eq.f32.partialorder %v2560_v45, 0.0  ;;  %vm1253_vm3 = vcmp.eq.f32.partialorder %v2577_v54, inf }
 0x1dc   :  { %v1237_v57 = vmul.f32 0.5, %v1236_v34  ;;  %v1230_v44 = vsel %vm1229_vm13, %v2555_v38, %v1228_v24  ;;  %v1256_v7 = vand.u32 2147483648, %v2577_v54  ;;  %vm1255_vm5 = vcmp.eq.f32.partialorder %v2577_v54, 0.0 }
 0x1dd   :  { %v1233_v39 = vsel %vm1231_vm15, %v1232_v21, %v1230_v44 }
 0x1de   :  { %v1238_v14 = vsub.f32 1.5, %v1237_v57 }
 0x1df   :  { %v2606_v13 = vpop.eup %2040 }
 0x1e0   :  { %v2587_v62 = vpop.xlane.xlu1 %1124  ;;  %v1247_v29 = vmul.f32 %v2606_v13, %v2577_v54  ;;  %v1239_v33 = vmul.f32 %v2597_v8, %v1238_v14  ;;  %v2714_v8 = vsel %vm1387_vm10, %v1388_v40, %v1386_v30  ;;  %v1562_v40 = vsel %vm1558_vm0, %v1209_v42, 0.0 }
 0x1e1   :  { %2042 = vrsqrt.f32 %v2587_v62  ;;  %v1563_v52 = vadd.f32 %v1562_v40, %v2652_v61  ;;  %vm1265_vm6 = vcmp.eq.f32.partialorder %v2587_v62, inf  ;;  %vm1267_vm7 = vcmp.eq.f32.partialorder %v2587_v62, 0.0 }
 0x1e2   :  { %v1248_v32 = vmul.f32 %v2606_v13, %v1247_v29  ;;  %v2694_v29 = vsel %vm1558_vm0, %v1377_v15, 0.0  ;;  %v1240_v50 = vmul.f32 %v1239_v33, %v2568_v51  ;;  %v1268_v33 = vand.u32 2147483648, %v2587_v62 }
 0x1e4   :  { %v1249_v3 = vmul.f32 0.5, %v1248_v32  ;;  %v1221_v32 = vsel %vm1219_vm12, %v1220_v2, %v1218_v1 }
 0x1e5   :  { %v1564_v20 = vsel %vm1558_vm0, %v1221_v32, 0.0 }
 0x1e6   :  { %v1250_v19 = vsub.f32 1.5, %v1249_v3  ;;  %v1565_v23 = vadd.f32 %v1564_v20, %v1563_v52 }
 0x1e7   :  { %v2627_v31 = vpop.eup %2042 }
 0x1e8   :  { %v2602_v10 = vpop.xlane.xlu2 %1126  ;;  %v1259_v53 = vmul.f32 %v2627_v31, %v2587_v62  ;;  %v1251_v18 = vmul.f32 %v2606_v13, %v1250_v19  ;;  %v1396_v13 = vmul.f32 %v1395_v48, %v2560_v45 }
 0x1e9   :  { %2044 = vrsqrt.f32 %v2602_v10  ;;  %vm1277_vm8 = vcmp.eq.f32.partialorder %v2602_v10, inf  ;;  %v1280_v44 = vand.u32 2147483648, %v2602_v10  ;;  %vm1279_vm10 = vcmp.eq.f32.partialorder %v2602_v10, 0.0 }
 0x1ea   :  { %v1260_v5 = vmul.f32 %v2627_v31, %v1259_v53  ;;  %v1244_v53 = vand.u32 2147483648, %v2568_v51  ;;  %v1252_v43 = vmul.f32 %v1251_v18, %v2577_v54  ;;  %v1398_v38 = vsel %vm1397_vm14, %v2560_v45, %v1396_v13 }
 0x1eb   :  { %v2758_v58 = vsel %vm1399_vm1, %v1400_v12, %v1398_v38 }
 0x1ec   :  { %v1261_v26 = vmul.f32 0.5, %v1260_v5  ;;  %v1242_v5 = vsel %vm1241_vm2, %v2568_v51, %v1240_v50  ;;  %v1254_v61 = vsel %vm1253_vm3, %v2577_v54, %v1252_v43 }
 0x1ed   :  { %v1245_v15 = vsel %vm1243_vm4, %v1244_v53, %v1242_v5  ;;  %v1257_v19 = vsel %vm1255_vm5, %v1256_v7, %v1254_v61 }
 0x1ee   :  { %v1262_v35 = vsub.f32 1.5, %v1261_v26  ;;  %v1568_v30 = vsel %vm1558_vm0, %v1245_v15, 0.0 }
 0x1ef   :  { %v2635_v47 = vpop.eup %2044 }
 0x1f0   :  { %v2612_v16 = vpop.xlane.xlu0 %1128  ;;  %v1271_v0 = vmul.f32 %v2635_v47, %v2602_v10  ;;  %v1263_v55 = vmul.f32 %v2627_v31, %v1262_v35 }
 0x1f1   :  { %2046 = vrsqrt.f32 %v2612_v16  ;;  %vm1289_vm9 = vcmp.eq.f32.partialorder %v2612_v16, inf  ;;  %vm1291_vm11 = vcmp.eq.f32.partialorder %v2612_v16, 0.0  ;;  %v1292_v40 = vand.u32 2147483648, %v2612_v16 }
 0x1f2   :  { %v1272_v17 = vmul.f32 %v2635_v47, %v1271_v0 }
 0x1f4   :  { %v1273_v34 = vmul.f32 0.5, %v1272_v17  ;;  %v1264_v17 = vmul.f32 %v1263_v55, %v2587_v62 }
 0x1f6   :  { %v1274_v59 = vsub.f32 1.5, %v1273_v34  ;;  %v1266_v48 = vsel %vm1265_vm6, %v2587_v62, %v1264_v17  ;;  %v2825_v17 = vsel %vm1558_vm0, %v2714_v8, 0.0 }
 0x1f7   :  { %v2648_v56 = vpop.eup %2046 }
 0x1f8   :  { %v2621_v25 = vpop.xlane.xlu1 %1130  ;;  %v1283_v6 = vmul.f32 %v2648_v56, %v2612_v16  ;;  %v1275_v11 = vmul.f32 %v2635_v47, %v1274_v59 }
 0x1f9   :  { %2048 = vrsqrt.f32 %v2621_v25  ;;  %vm1301_vm12 = vcmp.eq.f32.partialorder %v2621_v25, inf  ;;  %vm1303_vm13 = vcmp.eq.f32.partialorder %v2621_v25, 0.0 }
 0x1fa   :  { %v1284_v27 = vmul.f32 %v2648_v56, %v1283_v6  ;;  %v1566_v6 = vsel %vm1558_vm0, %v1233_v39, 0.0  ;;  %v1276_v24 = vmul.f32 %v1275_v11, %v2602_v10  ;;  %v1304_v39 = vand.u32 2147483648, %v2621_v25 }
 0x1fb   :  { %v1567_v47 = vadd.f32 %v1566_v6, %v1565_v23 }
 0x1fc   :  { %v1285_v41 = vmul.f32 0.5, %v1284_v27  ;;  %v1278_v42 = vsel %vm1277_vm8, %v2602_v10, %v1276_v24 }
 0x1fd   :  { %v1281_v50 = vsel %vm1279_vm10, %v1280_v44, %v1278_v42 }
 0x1fe   :  { %v1286_v3 = vsub.f32 1.5, %v1285_v41  ;;  %v1574_v20 = vsel %vm1558_vm0, %v1281_v50, 0.0 }
 0x1ff   :  { %v2659_v28 = vpop.eup %2048 }
 0x200   :  { %v2641_v46 = vpop.xlane.xlu2 %1132  ;;  %v1295_v60 = vmul.f32 %v2659_v28, %v2621_v25 }
 0x201   :  { %2050 = vrsqrt.f32 %v2641_v46  ;;  %vm1313_vm14 = vcmp.eq.f32.partialorder %v2641_v46, inf  ;;  %v1316_v23 = vand.u32 2147483648, %v2641_v46  ;;  %vm1315_vm15 = vcmp.eq.f32.partialorder %v2641_v46, 0.0 }
 0x202   :  { %v1296_v37 = vmul.f32 %v2659_v28, %v1295_v60  ;;  %v1287_v60 = vmul.f32 %v2648_v56, %v1286_v3 }
 0x204   :  { %v1297_v49 = vmul.f32 0.5, %v1296_v37  ;;  %v1288_v1 = vmul.f32 %v1287_v60, %v2612_v16  ;;  %v1569_v37 = vadd.f32 %v1568_v30, %v1567_v47 }
 0x206   :  { %v1298_v31 = vsub.f32 1.5, %v1297_v49  ;;  %v1290_v32 = vsel %vm1289_vm9, %v2612_v16, %v1288_v1 }
 0x207   :  { %v2687_v9 = vpop.eup %2050  ;;  %v1293_v49 = vsel %vm1291_vm11, %v1292_v40, %v1290_v32 }
 0x208   :  { %v2685_v22 = vpop.xlane.xlu0 %1134  ;;  %v1307_v4 = vmul.f32 %v2687_v9, %v2641_v46  ;;  %v1299_v26 = vmul.f32 %v2659_v28, %v1298_v31  ;;  %v1570_v28 = vsel %vm1558_vm0, %v1257_v19, 0.0  ;;  %v1576_v5 = vsel %vm1558_vm0, %v1293_v49, 0.0 }
 0x209   :  { %2052 = vrsqrt.f32 %v2685_v22  ;;  %v1571_v41 = vadd.f32 %v1570_v28, %v1569_v37  ;;  %vm1325_vm1 = vcmp.eq.f32.partialorder %v2685_v22, inf  ;;  %v2833_v19 = vsel %vm1558_vm0, %v2758_v58, 0.0 }
 0x20a   :  { %v1308_v57 = vmul.f32 %v2687_v9, %v1307_v4  ;;  %v1300_v21 = vmul.f32 %v1299_v26, %v2621_v25  ;;  %v1269_v4 = vsel %vm1267_vm7, %v1268_v33, %v1266_v48  ;;  %vm1327_vm2 = vcmp.eq.f32.partialorder %v2685_v22, 0.0 }
 0x20b   :  { %v1572_v53 = vsel %vm1558_vm0, %v1269_v4, 0.0  ;;  %v1328_v8 = vand.u32 2147483648, %v2685_v22 }
 0x20c   :  { %v1309_v14 = vmul.f32 0.5, %v1308_v57  ;;  %v1302_v59 = vsel %vm1301_vm12, %v2621_v25, %v1300_v21  ;;  %v1573_v52 = vadd.f32 %v1572_v53, %v1571_v41 }
 0x20d   :  { %v1305_v25 = vsel %vm1303_vm13, %v1304_v39, %v1302_v59 }
 0x20e   :  { %v1310_v45 = vsub.f32 1.5, %v1309_v14  ;;  %v1575_v31 = vadd.f32 %v1574_v20, %v1573_v52  ;;  %v1578_v61 = vsel %vm1558_vm0, %v1305_v25, 0.0 }
 0x20f   :  { %v2725_v36 = vpop.eup %2052 }
 0x210   :  { %v1319_v63 = vmul.f32 %v2725_v36, %v2685_v22  ;;  %v2735_v0 = vpop.xlane.xlu1 %1136  ;;  %v1311_v35 = vmul.f32 %v2687_v9, %v1310_v45  ;;  %v1577_v60 = vadd.f32 %v1576_v5, %v1575_v31 }
 0x211   :  { %2054 = vrsqrt.f32 %v2735_v0  ;;  %vm1337_vm3 = vcmp.eq.f32.partialorder %v2735_v0, inf  ;;  %vm1339_vm4 = vcmp.eq.f32.partialorder %v2735_v0, 0.0  ;;  %v1340_v44 = vand.u32 2147483648, %v2735_v0 }
 0x212   :  { %v1320_v2 = vmul.f32 %v2725_v36, %v1319_v63  ;;  %v1312_v43 = vmul.f32 %v1311_v35, %v2641_v46  ;;  %v1579_v30 = vadd.f32 %v1578_v61, %v1577_v60 }
 0x214   :  { %v1321_v27 = vmul.f32 0.5, %v1320_v2  ;;  %v1314_v2 = vsel %vm1313_vm14, %v2641_v46, %v1312_v43 }
 0x215   :  { %v1317_v24 = vsel %vm1315_vm15, %v1316_v23, %v1314_v2 }
 0x216   :  { %v1322_v18 = vsub.f32 1.5, %v1321_v27  ;;  %v1580_v37 = vsel %vm1558_vm0, %v1317_v24, 0.0 }
 0x217   :  { %v2762_v51 = vpop.eup %2054  ;;  %v1581_v41 = vadd.f32 %v1580_v37, %v1579_v30 }
 0x218   :  { %v1331_v56 = vmul.f32 %v2762_v51, %v2735_v0  ;;  %v2770_v12 = vpop.xlane.xlu1 %1148  ;;  %v2772_v54 = vpop.xlane.xlu2 %1138  ;;  %v1323_v10 = vmul.f32 %v2725_v36, %v1322_v18 }
 0x219   :  { %2056 = vrsqrt.f32 %v2770_v12  ;;  %vm1409_vm5 = vcmp.eq.f32.partialorder %v2770_v12, inf  ;;  %vm1349_vm6 = vcmp.eq.f32.partialorder %v2772_v54, inf  ;;  %vm1411_vm7 = vcmp.eq.f32.partialorder %v2770_v12, 0.0 }
 0x21a   :  { %v1332_v34 = vmul.f32 %v2762_v51, %v1331_v56  ;;  %2058 = vrsqrt.f32 %v2772_v54  ;;  %v1324_v6 = vmul.f32 %v1323_v10, %v2685_v22  ;;  %v1352_v49 = vand.u32 2147483648, %v2772_v54 }
 0x21b   :  { %vm1351_vm8 = vcmp.eq.f32.partialorder %v2772_v54, 0.0 }
 0x21c   :  { %v1333_v13 = vmul.f32 0.5, %v1332_v34 }
 0x21e   :  { %v1334_v55 = vsub.f32 1.5, %v1333_v13 }
 0x21f   :  { %v2794_v62 = vpop.eup %2056 }
 0x220   :  { %v2059_v9 = vpop.eup %2058  ;;  %v1403_v16 = vmul.f32 %v2794_v62, %v2770_v12  ;;  %v2804_v57 = vpop.xlane.xlu1 %1154  ;;  %v1335_v14 = vmul.f32 %v2762_v51, %v1334_v55  ;;  %v1326_v51 = vsel %vm1325_vm1, %v2685_v22, %v1324_v6 }
 0x221   :  { %v2806_v63 = vpop.xlane.xlu2 %1150  ;;  %v1343_v3 = vmul.f32 %v2059_v9, %v2772_v54  ;;  %2060 = vrsqrt.f32 %v2804_v57  ;;  %v2811_v36 = vpop.xlane.xlu0 %1140  ;;  %v1329_v22 = vsel %vm1327_vm2, %v1328_v8, %v1326_v51  ;;  %vm1445_vm9 = vcmp.eq.f32.partialorder %v2804_v57, inf }
 0x222   :  { %v1404_v38 = vmul.f32 %v2794_v62, %v1403_v16  ;;  %2062 = vrsqrt.f32 %v2806_v63  ;;  %v1336_v58 = vmul.f32 %v1335_v14, %v2735_v0  ;;  %v1582_v40 = vsel %vm1558_vm0, %v1329_v22, 0.0 }
 0x223   :  { %v1344_v11 = vmul.f32 %v2059_v9, %v1343_v3  ;;  %2064 = vrsqrt.f32 %v2811_v36  ;;  %v1583_v55 = vadd.f32 %v1582_v40, %v1581_v41  ;;  %v1448_v2 = vand.u32 2147483648, %v2804_v57 }
 0x224   :  { %v1405_v15 = vmul.f32 0.5, %v1404_v38  ;;  %v1338_v32 = vsel %vm1337_vm3, %v2735_v0, %v1336_v58  ;;  %v1424_v23 = vand.u32 2147483648, %v2806_v63  ;;  %vm1361_vm10 = vcmp.eq.f32.partialorder %v2811_v36, inf }
 0x225   :  { %v1345_v7 = vmul.f32 0.5, %v1344_v11  ;;  %vm1421_vm11 = vcmp.eq.f32.partialorder %v2806_v63, inf  ;;  %v1364_v51 = vand.u32 2147483648, %v2811_v36  ;;  %vm1447_vm12 = vcmp.eq.f32.partialorder %v2804_v57, 0.0 }
 0x226   :  { %v1406_v48 = vsub.f32 1.5, %v1405_v15  ;;  %vm1363_vm13 = vcmp.eq.f32.partialorder %v2811_v36, 0.0  ;;  %vm1423_vm14 = vcmp.eq.f32.partialorder %v2806_v63, 0.0 }
 0x227   :  { %v2829_v47 = vpop.eup %2060  ;;  %v1346_v26 = vsub.f32 1.5, %v1345_v7 }
 0x228   :  { %v2836_v27 = vpop.eup %2062  ;;  %v1439_v46 = vmul.f32 %v2829_v47, %v2804_v57  ;;  %v2842_v45 = vpop.xlane.xlu1 %1160  ;;  %v1407_v13 = vmul.f32 %v2794_v62, %v1406_v48  ;;  %v1412_v62 = vand.u32 2147483648, %v2770_v12 }
 0x229   :  { %v2844_v56 = vpop.xlane.xlu2 %1156  ;;  %v1347_v33 = vmul.f32 %v2059_v9, %v1346_v26  ;;  %v1415_v1 = vmul.f32 %v2836_v27, %v2806_v63  ;;  %v2849_v28 = vpop.xlane.xlu0 %1152  ;;  %v1341_v9 = vsel %vm1339_vm4, %v1340_v44, %v1338_v32  ;;  %vm1481_vm3 = vcmp.eq.f32.partialorder %v2842_v45, inf }
 0x22a   :  { %v2065_v34 = vpop.eup %2064  ;;  %v1440_v42 = vmul.f32 %v2829_v47, %v1439_v46  ;;  %2066 = vrsqrt.f32 %v2844_v56  ;;  %v1408_v3 = vmul.f32 %v1407_v13, %v2770_v12  ;;  %v1584_v11 = vsel %vm1558_vm0, %v1341_v9, 0.0 }
 0x22b   :  { %v1348_v21 = vmul.f32 %v1347_v33, %v2772_v54  ;;  %v1416_v18 = vmul.f32 %v2836_v27, %v1415_v1  ;;  %v1355_v4 = vmul.f32 %v2065_v34, %v2811_v36  ;;  %2068 = vrsqrt.f32 %v2842_v45 }
 0x22c   :  { %v1441_v35 = vmul.f32 0.5, %v1440_v42  ;;  %2070 = vrsqrt.f32 %v2849_v28  ;;  %v1410_v14 = vsel %vm1409_vm5, %v2770_v12, %v1408_v3  ;;  %v1484_v42 = vand.u32 2147483648, %v2842_v45 }
 0x22d   :  { %v1356_v50 = vmul.f32 %v2065_v34, %v1355_v4  ;;  %v1417_v53 = vmul.f32 0.5, %v1416_v18  ;;  %v1350_v59 = vsel %vm1349_vm6, %v2772_v54, %v1348_v21  ;;  %v1413_v58 = vsel %vm1411_vm7, %v1412_v62, %v1410_v14 }
 0x22e   :  { %v1442_v39 = vsub.f32 1.5, %v1441_v35  ;;  %v1353_v38 = vsel %vm1351_vm8, %v1352_v49, %v1350_v59  ;;  %v1596_v41 = vsel %vm1558_vm0, %v1413_v58, 0.0  ;;  %v1460_v32 = vand.u32 2147483648, %v2844_v56 }
 0x22f   :  { %v1357_v10 = vmul.f32 0.5, %v1356_v50  ;;  %v1418_v5 = vsub.f32 1.5, %v1417_v53  ;;  %v1586_v15 = vsel %vm1558_vm0, %v1353_v38, 0.0  ;;  %vm1433_vm15 = vcmp.eq.f32.partialorder %v2849_v28, inf }
 0x230   :  { %v2873_v43 = vpop.xlane.xlu1 %1166  ;;  %v2877_v20 = vpop.eup %2066  ;;  %v1443_v54 = vmul.f32 %v2829_v47, %v1442_v39  ;;  %v1585_v47 = vadd.f32 %v1584_v11, %v1583_v55  ;;  %vm1435_vm1 = vcmp.eq.f32.partialorder %v2849_v28, 0.0  ;;  %vm1457_vm2 = vcmp.eq.f32.partialorder %v2844_v56, inf }
 0x231   :  { %v2875_v16 = vpop.xlane.xlu2 %1162  ;;  %v1358_v52 = vsub.f32 1.5, %v1357_v10  ;;  %v2881_v25 = vpop.xlane.xlu0 %1158  ;;  %v1451_v6 = vmul.f32 %v2877_v20, %v2844_v56  ;;  %2072 = vrsqrt.f32 %v2873_v43  ;;  %v1419_v24 = vmul.f32 %v2836_v27, %v1418_v5 }
 0x232   :  { %v2883_v0 = vpop.eup %2068  ;;  %2074 = vrsqrt.f32 %v2875_v16  ;;  %v1587_v27 = vadd.f32 %v1586_v15, %v1585_v47  ;;  %v1444_v48 = vmul.f32 %v1443_v54, %v2804_v57  ;;  %vm1459_vm4 = vcmp.eq.f32.partialorder %v2844_v56, 0.0 }
 0x233   :  { %v1359_v31 = vmul.f32 %v2065_v34, %v1358_v52  ;;  %v2071_v61 = vpop.eup %2070  ;;  %v1475_v60 = vmul.f32 %v2883_v0, %v2842_v45  ;;  %v1452_v26 = vmul.f32 %v2877_v20, %v1451_v6  ;;  %2076 = vrsqrt.f32 %v2881_v25 }
 0x234   :  { %v1427_v8 = vmul.f32 %v2071_v61, %v2849_v28  ;;  %v1420_v18 = vmul.f32 %v1419_v24, %v2806_v63  ;;  %v1446_v50 = vsel %vm1445_vm9, %v2804_v57, %v1444_v48  ;;  %v1436_v52 = vand.u32 2147483648, %v2849_v28 }
 0x235   :  { %v1360_v7 = vmul.f32 %v1359_v31, %v2811_v36  ;;  %v1476_v22 = vmul.f32 %v2883_v0, %v1475_v60  ;;  %v1453_v44 = vmul.f32 0.5, %v1452_v26  ;;  %v1449_v38 = vsel %vm1447_vm12, %v1448_v2, %v1446_v50 }
 0x236   :  { %v1428_v12 = vmul.f32 %v2071_v61, %v1427_v8  ;;  %v1422_v49 = vsel %vm1421_vm11, %v2806_v63, %v1420_v18  ;;  %v2968_v24 = vsel %vm1558_vm0, %v1449_v38, 0.0  ;;  %vm1469_vm5 = vcmp.eq.f32.partialorder %v2881_v25, inf }
 0x237   :  { %v1362_v30 = vsel %vm1361_vm10, %v2811_v36, %v1360_v7  ;;  %v2911_v46 = vpop.eup %2072  ;;  %v1477_v10 = vmul.f32 0.5, %v1476_v22  ;;  %v1454_v55 = vsub.f32 1.5, %v1453_v44  ;;  %v1425_v54 = vsel %vm1423_vm14, %v1424_v23, %v1422_v49 }
 0x238   :  { %v1365_v33 = vsel %vm1363_vm13, %v1364_v51, %v1362_v30  ;;  %v2917_v1 = vpop.xlane.xlu1 %1172  ;;  %v2921_v36 = vpop.eup %2074  ;;  %v1429_v13 = vmul.f32 0.5, %v1428_v12  ;;  %v1511_v53 = vmul.f32 %v2911_v46, %v2873_v43  ;;  %v1496_v7 = vand.u32 2147483648, %v2875_v16 }
 0x239   :  { %v2919_v34 = vpop.xlane.xlu2 %1168  ;;  %v1588_v37 = vsel %vm1558_vm0, %v1365_v33, 0.0  ;;  %v2926_v21 = vpop.xlane.xlu0 %1164  ;;  %v1487_v35 = vmul.f32 %v2921_v36, %v2875_v16  ;;  %2078 = vrsqrt.f32 %v2917_v1  ;;  %v1455_v15 = vmul.f32 %v2877_v20, %v1454_v55 }
 0x23a   :  { %v1589_v4 = vadd.f32 %v1588_v37, %v1587_v27  ;;  %v2077_v59 = vpop.eup %2076  ;;  %v1430_v9 = vsub.f32 1.5, %v1429_v13  ;;  %2080 = vrsqrt.f32 %v2919_v34  ;;  %v1512_v6 = vmul.f32 %v2911_v46, %v1511_v53 }
 0x23b   :  { %v1488_v62 = vmul.f32 %v2921_v36, %v1487_v35  ;;  %2082 = vrsqrt.f32 %v2926_v21  ;;  %v1598_v51 = vsel %vm1558_vm0, %v1425_v54, 0.0  ;;  %v1456_v22 = vmul.f32 %v1455_v15, %v2844_v56 }
 0x23c   :  { %v1591_v40 = vadd.f32 %v2694_v29, %v1589_v4  ;;  %v1463_v29 = vmul.f32 %v2077_v59, %v2881_v25  ;;  %v1431_v3 = vmul.f32 %v2071_v61, %v1430_v9  ;;  %v1513_v30 = vmul.f32 0.5, %v1512_v6 }
 0x23d   :  { %v1489_v14 = vmul.f32 0.5, %v1488_v62  ;;  %vm1483_vm6 = vcmp.eq.f32.partialorder %v2842_v45, 0.0  ;;  %vm1493_vm7 = vcmp.eq.f32.partialorder %v2875_v16, inf  ;;  %v1458_v49 = vsel %vm1457_vm2, %v2844_v56, %v1456_v22 }
 0x23e   :  { %v1593_v39 = vadd.f32 %v2825_v17, %v1591_v40  ;;  %v1464_v11 = vmul.f32 %v2077_v59, %v1463_v29  ;;  %v1432_v61 = vmul.f32 %v1431_v3, %v2849_v28  ;;  %v1514_v50 = vsub.f32 1.5, %v1513_v30 }
 0x23f   :  { %v2955_v17 = vpop.eup %2078  ;;  %v1490_v27 = vsub.f32 1.5, %v1489_v14  ;;  %vm1495_vm8 = vcmp.eq.f32.partialorder %v2875_v16, 0.0  ;;  %vm1471_vm9 = vcmp.eq.f32.partialorder %v2881_v25, 0.0  ;;  %vm1505_vm10 = vcmp.eq.f32.partialorder %v2926_v21, inf }
 0x240   :  { %v1595_v5 = vadd.f32 %v2833_v19, %v1593_v39  ;;  %v1478_v19 = vsub.f32 1.5, %v1477_v10  ;;  %v1465_v60 = vmul.f32 0.5, %v1464_v11  ;;  %v2081_v47 = vpop.eup %2080  ;;  %v1547_v63 = vmul.f32 %v2955_v17, %v2917_v1 }
 0x241   :  { %v974_v31 = vpop.xlane.xlu2 %973  ;;  %v2963_v2 = vpop.xlane.xlu0 %1170  ;;  %v1434_v20 = vsel %vm1433_vm15, %v2849_v28, %v1432_v61  ;;  %v1523_v48 = vmul.f32 %v2081_v47, %v2919_v34  ;;  %v1491_v53 = vmul.f32 %v2921_v36, %v1490_v27  ;;  %v1515_v38 = vmul.f32 %v2911_v46, %v1514_v50 }
 0x242   :  { %v975_v57 = vrot.slane %v974_v31, 4  ;;  %2084 = vrsqrt.f32 %v2963_v2  ;;  %v1597_v26 = vadd.f32 %v1596_v41, %v1595_v5  ;;  %v1466_v8 = vsub.f32 1.5, %v1465_v60  ;;  %v2083_v58 = vpop.eup %2082 }
 0x243   :  { %v1479_v37 = vmul.f32 %v2883_v0, %v1478_v19  ;;  %v1499_v18 = vmul.f32 %v2083_v58, %v2926_v21  ;;  %v1548_v4 = vmul.f32 %v2955_v17, %v1547_v63  ;;  %v1524_v44 = vmul.f32 %v2081_v47, %v1523_v48 }
 0x244   :  { %v976_v23 = vadd.f32 %v975_v57, %v974_v31  ;;  %v1467_v12 = vmul.f32 %v2077_v59, %v1466_v8  ;;  %v1599_v41 = vadd.f32 %v1598_v51, %v1597_v26  ;;  %v1437_v13 = vsel %vm1435_vm1, %v1436_v52, %v1434_v20 }
 0x245   :  { %v1500_v0 = vmul.f32 %v2083_v58, %v1499_v18  ;;  %v1525_v10 = vmul.f32 0.5, %v1524_v44  ;;  %v1480_v62 = vmul.f32 %v1479_v37, %v2842_v45  ;;  %v1600_v55 = vsel %vm1558_vm0, %v1437_v13, 0.0 }
 0x246   :  { %v977_v33 = vrot.slane %v976_v23, 2  ;;  %v1468_v59 = vmul.f32 %v1467_v12, %v2881_v25  ;;  %v1549_v29 = vmul.f32 0.5, %v1548_v4  ;;  %v1601_v52 = vadd.f32 %v1600_v55, %v1599_v41 }
 0x247   :  { %v1501_v39 = vmul.f32 0.5, %v1500_v0  ;;  %v1526_v36 = vsub.f32 1.5, %v1525_v10  ;;  %v1492_v6 = vmul.f32 %v1491_v53, %v2875_v16  ;;  %v1472_v31 = vand.u32 2147483648, %v2881_v25 }
 0x248   :  { %v978_v35 = vadd.f32 %v977_v33, %v976_v23  ;;  %v2085_v40 = vpop.eup %2084  ;;  %v1470_v11 = vsel %vm1469_vm5, %v2881_v25, %v1468_v59  ;;  %v1482_v61 = vsel %vm1481_vm3, %v2842_v45, %v1480_v62  ;;  %v1461_v46 = vsel %vm1459_vm4, %v1460_v32, %v1458_v49 }
 0x249   :  { %v1535_v28 = vmul.f32 %v2085_v40, %v2963_v2  ;;  %v1502_v5 = vsub.f32 1.5, %v1501_v39  ;;  %v1527_v57 = vmul.f32 %v2081_v47, %v1526_v36  ;;  %v1508_v19 = vand.u32 2147483648, %v2926_v21 }
 0x24a   :  { %v979_v9 = vrot.slane %v978_v35, 1  ;;  %v1550_v60 = vsub.f32 1.5, %v1549_v29  ;;  %v1516_v63 = vmul.f32 %v1515_v38, %v2873_v43  ;;  %v1473_v51 = vsel %vm1471_vm9, %v1472_v31, %v1470_v11 }
 0x24b   :  { %v1536_v54 = vmul.f32 %v2085_v40, %v1535_v28  ;;  %v1503_v14 = vmul.f32 %v2083_v58, %v1502_v5  ;;  %v1603_v26 = vadd.f32 %v2968_v24, %v1601_v52  ;;  %v1494_v56 = vsel %vm1493_vm7, %v2875_v16, %v1492_v6 }
 0x24c   :  { %v980_v3 = vadd.f32 %v979_v9, %v978_v35  ;;  %v1485_v32 = vsel %vm1483_vm6, %v1484_v42, %v1482_v61  ;;  %v1604_v30 = vsel %vm1558_vm0, %v1461_v46, 0.0  ;;  %vm1507_vm11 = vcmp.eq.f32.partialorder %v2926_v21, 0.0 }
 0x24d   :  { %v1537_v15 = vmul.f32 0.5, %v1536_v54  ;;  %v1504_v23 = vmul.f32 %v1503_v14, %v2926_v21  ;;  %v1528_v25 = vmul.f32 %v1527_v57, %v2919_v34  ;;  %v1605_v58 = vadd.f32 %v1604_v30, %v1603_v26 }
 0x24e   :  { %2017 = vpush %v980_v3  ;;  %vm1517_vm12 = vcmp.eq.f32.partialorder %v2873_v43, inf  ;;  %v1551_v20 = vmul.f32 %v2955_v17, %v1550_v60  ;;  %v1606_v27 = vsel %vm1558_vm0, %v1473_v51, 0.0  ;;  %v1497_v45 = vsel %vm1495_vm8, %v1496_v7, %v1494_v56 }
 0x24f   :  { %v1538_v47 = vsub.f32 1.5, %v1537_v15  ;;  %v1506_v8 = vsel %vm1505_vm10, %v2926_v21, %v1504_v23  ;;  %v1518_v48 = vsel %vm1517_vm12, %v2873_v43, %v1516_v63  ;;  %v1607_v33 = vadd.f32 %v1606_v27, %v1605_v58 }
 0x250   :  { %v1509_v42 = vsel %vm1507_vm11, %v1508_v19, %v1506_v8  ;;  %vm1519_vm13 = vcmp.eq.f32.partialorder %v2873_v43, 0.0  ;;  %vm1529_vm14 = vcmp.eq.f32.partialorder %v2919_v34, inf  ;;  %v1608_v37 = vsel %vm1558_vm0, %v1485_v32, 0.0 }
 0x251   :  { %v1539_v24 = vmul.f32 %v2085_v40, %v1538_v47  ;;  %v1520_v17 = vand.u32 2147483648, %v2873_v43  ;;  %v1530_v22 = vsel %vm1529_vm14, %v2919_v34, %v1528_v25  ;;  %vm1541_vm15 = vcmp.eq.f32.partialorder %v2963_v2, inf }
 0x252   :  { %v1609_v16 = vadd.f32 %v1608_v37, %v1607_v33  ;;  %v1552_v12 = vmul.f32 %v1551_v20, %v2917_v1  ;;  %v1610_v18 = vsel %vm1558_vm0, %v1497_v45, 0.0  ;;  %v1612_v4 = vsel %vm1558_vm0, %v1509_v42, 0.0 }
 0x253   :  { %v1540_v21 = vmul.f32 %v1539_v24, %v2963_v2  ;;  %v1521_v44 = vsel %vm1519_vm13, %v1520_v17, %v1518_v48  ;;  %v1532_v35 = vand.u32 2147483648, %v2919_v34  ;;  %v1544_v41 = vand.u32 2147483648, %v2963_v2 }
 0x254   :  { %v1611_v13 = vadd.f32 %v1610_v18, %v1609_v16  ;;  %vm1531_vm1 = vcmp.eq.f32.partialorder %v2919_v34, 0.0  ;;  %vm1543_vm2 = vcmp.eq.f32.partialorder %v2963_v2, 0.0  ;;  %vm1553_vm3 = vcmp.eq.f32.partialorder %v2917_v1, inf }
 0x255   :  { %v1542_v7 = vsel %vm1541_vm15, %v2963_v2, %v1540_v21  ;;  %v1533_v43 = vsel %vm1531_vm1, %v1532_v35, %v1530_v22  ;;  %v1554_v40 = vsel %vm1553_vm3, %v2917_v1, %v1552_v12  ;;  %v1614_v53 = vsel %vm1558_vm0, %v1521_v44, 0.0 }
 0x256   :  { %v1545_v50 = vsel %vm1543_vm2, %v1544_v41, %v1542_v7  ;;  %v1613_v0 = vadd.f32 %v1612_v4, %v1611_v13  ;;  %v1556_v59 = vand.u32 2147483648, %v2917_v1  ;;  %vm1555_vm4 = vcmp.eq.f32.partialorder %v2917_v1, 0.0 }
 0x257   :  { %v1616_v9 = vsel %vm1558_vm0, %v1533_v43, 0.0  ;;  %v1618_v34 = vsel %vm1558_vm0, %v1545_v50, 0.0 }
 0x258   :  { %v1615_v10 = vadd.f32 %v1614_v53, %v1613_v0  ;;  %v1557_v62 = vsel %vm1555_vm4, %v1556_v59, %v1554_v40 }
 0x259   :  { %v1620_v39 = vsel %vm1558_vm0, %v1557_v62, 0.0 }
 0x25a   :  { %v1617_v2 = vadd.f32 %v1616_v9, %v1615_v10 }
 0x25c   :  { %v1619_v49 = vadd.f32 %v1618_v34, %v1617_v2 }
 0x25e   :  { %v1621_v28 = vadd.f32 %v1620_v39, %v1619_v49 }
 0x260   :  { %1622 = vadd.xlane.f32.xlu0 %v1621_v28 }
 0x27f   :  { %s2018_s0 = spop %2017 }
 0x280   :  { %v1631_v55 = vstv %s2018_s0 }
 0x281   :  { %1632 = vst [vmem:[%s3073_s6] sm:$0xff] %v1631_v55 }
 0x2d3   :  { %v1623_v29 = vpop.xlane.xlu0 %1622 }
 0x2d4   :  { %v1624_v3 = vrot.slane %v1623_v29, 4 }
 0x2d6   :  { %v1625_v1 = vadd.f32 %v1624_v3, %v1623_v29 }
 0x2d8   :  { %v1626_v36 = vrot.slane %v1625_v1, 2 }
 0x2da   :  { %v1627_v52 = vadd.f32 %v1626_v36, %v1625_v1 }
 0x2dc   :  { %v1628_v38 = vrot.slane %v1627_v52, 1 }
 0x2de   :  { %v1629_v5 = vadd.f32 %v1628_v38, %v1627_v52 }
 0x2e0   :  { %2019 = vpush %v1629_v5 }
 0x311   :  { %s2020_s11 = spop %2019 }
 0x312   :  { %v1633_v6 = vstv %s2020_s11 }
 0x313   :  { %1634 = vst [vmem:[%s3074_s7] sm:$0xff] %v1633_v6 }

</bundles_post_ra>
